<compile_context>
chip_gen: v7x
topology: tpu7x:2x2x1
jax: 0.10.0
libtpu: 0.0.40
codegen_flags: <defaults>
</compile_context>

<pallas_src>
import math

import jax
import jax.numpy as jnp
from jax.experimental import pallas as pl
from jax.experimental.pallas import tpu as pltpu

# ---- problem sizes (small, consistent with the module) --------------------
B = 2          # batch
L = 8          # sequence length
H = 4          # number of heads
D_MODEL = 32   # model dim
D_K = D_MODEL // H
N_TOK = B * L  # flattened tokens
LANE = 128     # TPU lane width (lane-dense output padding)

_HP = jax.lax.Precision.HIGHEST   # exact-f32 matmuls everywhere


def mha_kernel(xqT_ref, xkT_ref, xvT_ref, wT_ref, bT_ref, wo_ref, bo_ref,
               mask_ref, out_ref):
    D = D_MODEL
    N = N_TOK

    # ---- projections in transposed form: (D, D) @ (D, N) -> (D, N) --------
    # 1/sqrt(d_k) is already folded into the q weight / bias (wrapper).
    qT = jnp.dot(wT_ref[0:D, :], xqT_ref[...],
                 precision=_HP, preferred_element_type=jnp.float32) + bT_ref[0:D, :]
    kT = jnp.dot(wT_ref[D:2 * D, :], xkT_ref[...],
                 precision=_HP, preferred_element_type=jnp.float32) + bT_ref[D:2 * D, :]
    vT = jnp.dot(wT_ref[2 * D:3 * D, :], xvT_ref[...],
                 precision=_HP, preferred_element_type=jnp.float32) + bT_ref[2 * D:3 * D, :]

    # ---- free head split along the sublane axis ---------------------------
    q3 = qT.reshape(H, D_K, N)           # (H, d_k, N)
    k3 = kT.reshape(H, D_K, N)
    v3 = vT.reshape(H, D_K, N)
    q3t = jnp.swapaxes(q3, 1, 2)         # (H, N, d_k): tokens on rows for the MXU

    # ---- scores over ALL token pairs: one matmul per head -----------------
    # Cross-batch (q, k) entries are computed redundantly and masked out of p
    # below; that is cheaper than H*B tiny 8x8 MXU passes.
    scores = jnp.einsum("hqd,hdk->hqk", q3t, k3,
                        precision=_HP,
                        preferred_element_type=jnp.float32)     # (H, N, N)

    # ---- softmax over the HEAD axis (reference: F.softmax(scores, dim=1)) -
    m = jnp.max(scores, axis=0, keepdims=True)                  # (1, N, N)
    e = jnp.exp(scores - m)                                     # (H, N, N)
    denom = jnp.sum(e, axis=0, keepdims=True)                   # (1, N, N)
    # Exact normalization; the same-batch mask zeroes cross-batch columns so
    # they never contribute to the context matmul.
    p = e * (mask_ref[...] / denom)                             # (H, N, N)

    # TODO(synk): dropout on p_attn is identity in eval mode; not implemented.
    # TODO(synk): optional attention mask not implemented (forward uses mask=None).

    # ---- per-head context, kept transposed: (H, d_k, N) -------------------
    ctx = jnp.einsum("hdk,hqk->hdq", v3, p,
                     precision=_HP,
                     preferred_element_type=jnp.float32)        # (H, d_k, N)

    # ---- free head re-merge + lane-dense output projection ----------------
    x_catT = ctx.reshape(D, N)           # heads back on the feature axis
    x_cat = x_catT.T                     # (N, D): one small XLU transpose
    out = jnp.dot(x_cat, wo_ref[...],
                  precision=_HP, preferred_element_type=jnp.float32) + bo_ref[...]
    out_ref[...] = out.astype(out_ref.dtype)                    # (N, 128)


def multi_head_attention(query, key, value, params):
    """query/key/value: (B, L, D) float32. params: dict of per-linear weights/biases."""
    Bq, Lq, D = query.shape
    assert (Bq, Lq, D) == (B, L, D_MODEL)
    N = Bq * Lq
    scale = 1.0 / math.sqrt(D_K)

    # ---- wrapper-side layout plumbing (runs once, outside the kernel) -----
    # Transposed activations (D, N): the in-kernel projections then produce a
    # head-major (H, d_k, N) layout via a free sublane reshape (no lane slicing).
    xqT = query.reshape(N, D).T
    xkT = key.reshape(N, D).T
    xvT = value.reshape(N, D).T

    # Fused, pre-transposed projection weights; 1/sqrt(d_k) folded into Wq/bq.
    wT_qkv = jnp.concatenate(
        [params["wq"] * scale, params["wk"], params["wv"]], axis=1).T   # (3D, D)
    bT_qkv = jnp.concatenate(
        [params["bq"] * scale, params["bk"], params["bv"]], axis=1).T   # (3D, 1)

    # Lane-dense output: pad Wo / bo with zero columns up to 128 lanes.
    wo_pad = jnp.zeros((D, LANE), jnp.float32).at[:, :D].set(params["wo"])
    bo_pad = jnp.zeros((1, LANE), jnp.float32).at[:, :D].set(params["bo"])

    # Same-batch mask for the flattened token axis (n = b * L + l), hoisted
    # out of the kernel.
    batch_id = jnp.arange(N, dtype=jnp.int32) // Lq
    mask = (batch_id[:, None] == batch_id[None, :]).astype(jnp.float32)  # (N, N)

    vmem = pl.BlockSpec(memory_space=pltpu.MemorySpace.VMEM)   # whole-array VMEM block
    out_pad = pl.pallas_call(
        mha_kernel,
        out_shape=jax.ShapeDtypeStruct((N, LANE), jnp.float32),
        in_specs=[vmem] * 8,
        out_specs=vmem,
    )(xqT, xkT, xvT, wT_qkv, bT_qkv, wo_pad, bo_pad, mask)
    return out_pad[:, :D].reshape(Bq, Lq, D)


def reference_mha(query, key, value, params):
    """Pure-JAX mirror of the PyTorch forward (eval mode, mask=None)."""
    Bq, Lq, D = query.shape
    q = jnp.dot(query, params["wq"], precision=_HP) + params["bq"]
    k = jnp.dot(key, params["wk"], precision=_HP) + params["bk"]
    v = jnp.dot(value, params["wv"], precision=_HP) + params["bv"]
    q = q.reshape(Bq, Lq, H, D_K).transpose(0, 2, 1, 3)
    k = k.reshape(Bq, Lq, H, D_K).transpose(0, 2, 1, 3)
    v = v.reshape(Bq, Lq, H, D_K).transpose(0, 2, 1, 3)
    scores = jnp.einsum("bhqd,bhkd->bhqk", q, k, precision=_HP) / math.sqrt(D_K)
    p = jax.nn.softmax(scores, axis=1)            # softmax over heads (dim=1)
    x = jnp.einsum("bhqk,bhkd->bhqd", p, v, precision=_HP)
    x = x.transpose(0, 2, 1, 3).reshape(Bq, Lq, H * D_K)
    return jnp.dot(x, params["wo"], precision=_HP) + params["bo"]


def init_params(key, d_model):
    ks = jax.random.split(key, 8)
    scale = 1.0 / math.sqrt(d_model)
    def w(k):
        return jax.random.normal(k, (d_model, d_model), jnp.float32) * scale
    def b(k):
        return jax.random.normal(k, (1, d_model), jnp.float32) * scale
    return {
        "wq": w(ks[0]), "bq": b(ks[1]),
        "wk": w(ks[2]), "bk": b(ks[3]),
        "wv": w(ks[4]), "bv": b(ks[5]),
        "wo": w(ks[6]), "bo": b(ks[7]),
    }


if __name__ == "__main__":
    root = jax.random.PRNGKey(0)
    k_x, k_p = jax.random.split(root)
    x = jax.random.normal(k_x, (B, L, D_MODEL), jnp.float32)
    params = init_params(k_p, D_MODEL)

    # Self-attention: query = key = value = x (matches typical usage).
    out = multi_head_attention(x, x, x, params)
    out = jax.block_until_ready(out)

    ref = reference_mha(x, x, x, params)
    assert out.shape == (B, L, D_MODEL)
    assert jnp.allclose(out, ref, rtol=5e-4, atol=5e-4), "mismatch vs reference"

    print("KERNEL_OK")
</pallas_src>

<mosaic_0001>
module attributes {stable_mosaic.version = 11 : i64} {
  func.func @mha_kernel(%arg0: memref<32x16xf32, #tpu.memory_space<vmem>>, %arg1: memref<32x16xf32, #tpu.memory_space<vmem>>, %arg2: memref<32x16xf32, #tpu.memory_space<vmem>>, %arg3: memref<96x32xf32, #tpu.memory_space<vmem>>, %arg4: memref<96x1xf32, #tpu.memory_space<vmem>>, %arg5: memref<32x128xf32, #tpu.memory_space<vmem>>, %arg6: memref<1x128xf32, #tpu.memory_space<vmem>>, %arg7: memref<16x16xf32, #tpu.memory_space<vmem>>, %arg8: memref<16x128xf32, #tpu.memory_space<vmem>>) attributes {dimension_semantics = [], scalar_prefetch = 0 : i64, scratch_operands = 0 : i64, tpu.core_type = #tpu.core_type<tc>} {
    %c0 = arith.constant 0 : index
    %c0_0 = arith.constant 0 : index
    %0 = vector.load %arg3[%c0, %c0_0] : memref<96x32xf32, #tpu.memory_space<vmem>>, vector<32x32xf32>
    %c0_1 = arith.constant 0 : index
    %c0_2 = arith.constant 0 : index
    %1 = vector.load %arg0[%c0_1, %c0_2] : memref<32x16xf32, #tpu.memory_space<vmem>>, vector<32x16xf32>
    %cst = arith.constant dense<0.000000e+00> : vector<32x16xf32>
    %2 = tpu.matmul %0, %1, %cst {dimension_numbers = #tpu.dot_dimension_numbers<[1], [0], [0], [1], [0, 0, 1, 1], [], []>, precision = #tpu.contract_precision<fp32>} : vector<32x32xf32>, vector<32x16xf32>, vector<32x16xf32> -> vector<32x16xf32>
    %c0_3 = arith.constant 0 : index
    %c0_4 = arith.constant 0 : index
    %3 = vector.load %arg4[%c0_3, %c0_4] : memref<96x1xf32, #tpu.memory_space<vmem>>, vector<32x1xf32>
    %4 = vector.broadcast %3 : vector<32x1xf32> to vector<32x16xf32>
    %5 = arith.addf %2, %4 : vector<32x16xf32>
    %c32 = arith.constant 32 : index
    %c0_5 = arith.constant 0 : index
    %6 = vector.load %arg3[%c32, %c0_5] : memref<96x32xf32, #tpu.memory_space<vmem>>, vector<32x32xf32>
    %c0_6 = arith.constant 0 : index
    %c0_7 = arith.constant 0 : index
    %7 = vector.load %arg1[%c0_6, %c0_7] : memref<32x16xf32, #tpu.memory_space<vmem>>, vector<32x16xf32>
    %cst_8 = arith.constant dense<0.000000e+00> : vector<32x16xf32>
    %8 = tpu.matmul %6, %7, %cst_8 {dimension_numbers = #tpu.dot_dimension_numbers<[1], [0], [0], [1], [0, 0, 1, 1], [], []>, precision = #tpu.contract_precision<fp32>} : vector<32x32xf32>, vector<32x16xf32>, vector<32x16xf32> -> vector<32x16xf32>
    %c32_9 = arith.constant 32 : index
    %c0_10 = arith.constant 0 : index
    %9 = vector.load %arg4[%c32_9, %c0_10] : memref<96x1xf32, #tpu.memory_space<vmem>>, vector<32x1xf32>
    %10 = vector.broadcast %9 : vector<32x1xf32> to vector<32x16xf32>
    %11 = arith.addf %8, %10 : vector<32x16xf32>
    %c64 = arith.constant 64 : index
    %c0_11 = arith.constant 0 : index
    %12 = vector.load %arg3[%c64, %c0_11] : memref<96x32xf32, #tpu.memory_space<vmem>>, vector<32x32xf32>
    %c0_12 = arith.constant 0 : index
    %c0_13 = arith.constant 0 : index
    %13 = vector.load %arg2[%c0_12, %c0_13] : memref<32x16xf32, #tpu.memory_space<vmem>>, vector<32x16xf32>
    %cst_14 = arith.constant dense<0.000000e+00> : vector<32x16xf32>
    %14 = tpu.matmul %12, %13, %cst_14 {dimension_numbers = #tpu.dot_dimension_numbers<[1], [0], [0], [1], [0, 0, 1, 1], [], []>, precision = #tpu.contract_precision<fp32>} : vector<32x32xf32>, vector<32x16xf32>, vector<32x16xf32> -> vector<32x16xf32>
    %c64_15 = arith.constant 64 : index
    %c0_16 = arith.constant 0 : index
    %15 = vector.load %arg4[%c64_15, %c0_16] : memref<96x1xf32, #tpu.memory_space<vmem>>, vector<32x1xf32>
    %16 = vector.broadcast %15 : vector<32x1xf32> to vector<32x16xf32>
    %17 = arith.addf %14, %16 : vector<32x16xf32>
    %18 = vector.shape_cast %5 : vector<32x16xf32> to vector<4x8x16xf32>
    %19 = vector.shape_cast %11 : vector<32x16xf32> to vector<4x8x16xf32>
    %20 = vector.shape_cast %17 : vector<32x16xf32> to vector<4x8x16xf32>
    %21 = tpu.transpose %18, [0, 2, 1] : vector<4x8x16xf32> -> vector<4x16x8xf32>
    "tpu.trace_start"() <{level = 10 : i32, message = "hqd,hdk->hqk"}> : () -> ()
    %cst_17 = arith.constant dense<0.000000e+00> : vector<4x16x16xf32>
    %22 = tpu.matmul %21, %19, %cst_17 {dimension_numbers = #tpu.dot_dimension_numbers<[2], [1], [1], [2], [0, 0, 0, 1, 1, 2], [0], [0]>, precision = #tpu.contract_precision<fp32>} : vector<4x16x8xf32>, vector<4x8x16xf32>, vector<4x16x16xf32> -> vector<4x16x16xf32>
    "tpu.trace_stop"() : () -> ()
    %cst_18 = arith.constant dense<0xFF800000> : vector<16x16xf32>
    %23 = vector.multi_reduction <maximumf>, %22, %cst_18 [0] : vector<4x16x16xf32> to vector<16x16xf32>
    %24 = vector.shape_cast %23 : vector<16x16xf32> to vector<1x16x16xf32>
    %25 = vector.broadcast %24 : vector<1x16x16xf32> to vector<4x16x16xf32>
    %26 = arith.subf %22, %25 : vector<4x16x16xf32>
    %27 = math.exp %26 : vector<4x16x16xf32>
    %cst_19 = arith.constant dense<0.000000e+00> : vector<16x16xf32>
    %28 = vector.multi_reduction <add>, %27, %cst_19 [0] : vector<4x16x16xf32> to vector<16x16xf32>
    %29 = vector.shape_cast %28 : vector<16x16xf32> to vector<1x16x16xf32>
    %c0_20 = arith.constant 0 : index
    %c0_21 = arith.constant 0 : index
    %30 = vector.load %arg7[%c0_20, %c0_21] : memref<16x16xf32, #tpu.memory_space<vmem>>, vector<16x16xf32>
    %31 = vector.shape_cast %30 : vector<16x16xf32> to vector<1x16x16xf32>
    %32 = arith.divf %31, %29 : vector<1x16x16xf32>
    %33 = vector.broadcast %32 : vector<1x16x16xf32> to vector<4x16x16xf32>
    %34 = arith.mulf %27, %33 : vector<4x16x16xf32>
    "tpu.trace_start"() <{level = 10 : i32, message = "hdk,hqk->hdq"}> : () -> ()
    %cst_22 = arith.constant dense<0.000000e+00> : vector<4x8x16xf32>
    %35 = tpu.matmul %20, %34, %cst_22 {dimension_numbers = #tpu.dot_dimension_numbers<[2], [2], [1], [1], [0, 0, 0, 1, 1, 1], [0], [0]>, precision = #tpu.contract_precision<fp32>} : vector<4x8x16xf32>, vector<4x16x16xf32>, vector<4x8x16xf32> -> vector<4x8x16xf32>
    "tpu.trace_stop"() : () -> ()
    %36 = vector.shape_cast %35 : vector<4x8x16xf32> to vector<32x16xf32>
    %37 = tpu.transpose %36, [1, 0] : vector<32x16xf32> -> vector<16x32xf32>
    %c0_23 = arith.constant 0 : index
    %c0_24 = arith.constant 0 : index
    %38 = vector.load %arg5[%c0_23, %c0_24] : memref<32x128xf32, #tpu.memory_space<vmem>>, vector<32x128xf32>
    %cst_25 = arith.constant dense<0.000000e+00> : vector<16x128xf32>
    %39 = tpu.matmul %37, %38, %cst_25 {dimension_numbers = #tpu.dot_dimension_numbers<[1], [0], [0], [1], [0, 0, 1, 1], [], []>, precision = #tpu.contract_precision<fp32>} : vector<16x32xf32>, vector<32x128xf32>, vector<16x128xf32> -> vector<16x128xf32>
    %c0_26 = arith.constant 0 : index
    %c0_27 = arith.constant 0 : index
    %40 = vector.load %arg6[%c0_26, %c0_27] : memref<1x128xf32, #tpu.memory_space<vmem>>, vector<1x128xf32>
    %41 = vector.broadcast %40 : vector<1x128xf32> to vector<16x128xf32>
    %42 = arith.addf %39, %41 : vector<16x128xf32>
    %c0_28 = arith.constant 0 : index
    %c0_29 = arith.constant 0 : index
    %43 = vector.load %arg8[%c0_28, %c0_29] : memref<16x128xf32, #tpu.memory_space<vmem>>, vector<16x128xf32>
    tpu.vector_store %arg8[%c0_28, %c0_29], %42 {strides = array<i32>} : memref<16x128xf32, #tpu.memory_space<vmem>>, vector<16x128xf32>,
    return
  }
}

</mosaic_0001>

<bundles_post_ra>
// kernel: tpu_custom_call.1
= control target key start
LH: loop header
LB: loop body
LE: loop exit
PB: predicated region body
PF: predicated region fallthrough
CT: control target
= control target key end

     0   :  { %vm62_vm0 = vcmask 261120   ;;  %v8060_v9 = vmov 0   ;;  %s8955_s0 = inlined_call_operand.vmem [shape: f32[32,16], index: 0, kind: input, shape index: {}]   ;;  %s8956_s1 = inlined_call_operand.vmem [shape: f32[32,16], index: 1, kind: input, shape index: {}]   ;;  %s8957_s2 = inlined_call_operand.vmem [shape: f32[32,16], index: 2, kind: input, shape index: {}]   ;;  %s8958_s3 = inlined_call_operand.vmem [shape: f32[96,32], index: 3, kind: input, shape index: {}]   ;;  %s8959_s4 = inlined_call_operand.vmem [shape: f32[96,1], index: 4, kind: input, shape index: {}]   ;;  %s8960_s5 = inlined_call_operand.vmem [shape: f32[32,128], index: 5, kind: input, shape index: {}]   ;;  %s8961_s6 = inlined_call_operand.vmem [shape: f32[1,128], index: 6, kind: input, shape index: {}]   ;;  %s8962_s7 = inlined_call_operand.vmem [shape: f32[16,16], index: 7, kind: input, shape index: {}]   ;;  %s8963_s8 = inlined_call_operand.hbm [shape: f32[16,128], index: 8, kind: output, shape index: {}]  }
   0x1   :  { %v34_v0 = vld [vmem:[%s8955_s0] sm:$0xff]  ;;  %v35_v1 = vld [vmem:[%s8955_s0 + $0x8] sm:$0xff]  ;;  %v36_v2 = vld [vmem:[%s8955_s0 + $0x10] sm:$0xff]  ;;  %8014 = vset.pattern.permute.xlu0 %v8060_v9  ;;  %8015 = vset.pattern.permute.xlu1 %v8060_v9 }
   0x2   :  { %v76_v3 = vand.u32 4294901760, %v34_v0  ;;  %v79_v4 = vand.u32 4294901760, %v35_v1  ;;  %v37_v5 = vld [vmem:[%s8955_s0 + $0x18] sm:$0xff]  ;;  %v82_v6 = vand.u32 4294901760, %v36_v2  ;;  %v30_v7 = vld [vmem:[%s8958_s3] sm:$0xff]  ;;  %v31_v8 = vld [vmem:[%s8958_s3 + $0x8] sm:$0xff] }
   0x3   :  { %v85_v10 = vand.u32 4294901760, %v37_v5  ;;  %v64_v11 = vsel %vm62_vm0, %v30_v7, 0  ;;  %v67_v12 = vsel %vm62_vm0, %v31_v8, 0  ;;  %v32_v13 = vld [vmem:[%s8958_s3 + $0x10] sm:$0xff]  ;;  %v33_v14 = vld [vmem:[%s8958_s3 + $0x18] sm:$0xff]  ;;  %v38_v27 = vld [vmem:[%s8959_s4] sm:$0xff] }
   0x4   :  { %v8138_v15 = vpack.c.bf16 %v79_v4, %v76_v3  ;;  %v8140_v16 = vand.u32 4294901760, %v64_v11  ;;  %v8142_v17 = vand.u32 4294901760, %v67_v12  ;;  %v8144_v18 = vsub.f32 %v34_v0, %v76_v3  ;;  %v697_v36 = vld [vmem:[%s8959_s4 + $0x20] sm:$0xff]  ;;  %44 = vperm.xlu0 %8014, %v38_v27  }
   0x5   :  { %v8146_v19 = vpack.c.bf16 %v85_v10, %v82_v6  ;;  %v8148_v20 = vsub.f32 %v35_v1, %v79_v4  ;;  %v70_v21 = vsel %vm62_vm0, %v32_v13, 0  ;;  %v73_v22 = vsel %vm62_vm0, %v33_v14, 0  ;;  %703 = vperm.xlu1 %8015, %v697_v36  }
   0x6   :  { %7580 = vmatprep.subr.bf16.mxu1 %v8138_v15  ;;  %7604 = vmatprep.subr.bf16.mxu0 %v8138_v15  ;;  %v8155_v23 = vsub.f32 %v64_v11, %v8140_v16  ;;  %v8158_v24 = vsub.f32 %v67_v12, %v8142_v17  ;;  %v187_v25 = vand.u32 4294901760, %v8144_v18  ;;  %v8161_v26 = vand.u32 4294901760, %v70_v21 }
   0x7   :  { %7582 = vmatpush3.bf16.msra.mxu1 %v8138_v15  ;;  %7606 = vmatpush3.bf16.msra.mxu0 %v8138_v15  ;;  %v194_v28 = vand.u32 4294901760, %v8148_v20  ;;  %v8169_v29 = vand.u32 4294901760, %v73_v22  ;;  %v8171_v30 = vsub.f32 %v36_v2, %v82_v6  ;;  %v8173_v31 = vsub.f32 %v37_v5, %v85_v10 }
   0x8   :  { %7584 = vmatprep.subr.bf16.mxu1 %v8146_v19  ;;  %7608 = vmatprep.subr.bf16.mxu0 %v8146_v19  ;;  %v146_v32 = vand.u32 4294901760, %v8155_v23  ;;  %v156_v33 = vand.u32 4294901760, %v8158_v24  ;;  %v188_v34 = vsub.f32 %v8144_v18, %v187_v25  ;;  %v8181_v35 = vsub.f32 %v70_v21, %v8161_v26 }
   0x9   :  { %v195_v37 = vsub.f32 %v8148_v20, %v194_v28  ;;  %v7611_v38 = vpack.c.bf16 %v194_v28, %v187_v25  ;;  %v8188_v39 = vsub.f32 %v73_v22, %v8169_v29  ;;  %v201_v40 = vand.u32 4294901760, %v8171_v30 }
   0xa   :  { %13 = vsyncpa [#allocation3], 0  ;;  %v147_v41 = vsub.f32 %v8155_v23, %v146_v32  ;;  %7023 = vmatprep.mubr.f32.mxu0 %v146_v32  ;;  %v157_v42 = vsub.f32 %v8158_v24, %v156_v33  ;;  %v189_v43 = vand.u32 4294901760, %v188_v34  ;;  %v166_v44 = vand.u32 4294901760, %v8181_v35  ;;  %v39_v45 = vld [vmem:[%s8959_s4 + $0x8] sm:$0xff]  ;;  %v8205_v50 = vld [vmem:[%s8956_s1] sm:$0xff] }
   0xb   :  { %7586 = vmatpush3.bf16.msra.mxu1 %v8146_v19  ;;  %7610 = vmatpush3.bf16.msra.mxu0 %v8146_v19  ;;  %v196_v46 = vand.u32 4294901760, %v195_v37  ;;  %v176_v47 = vand.u32 4294901760, %v8188_v39  ;;  %v202_v48 = vsub.f32 %v8171_v30, %v201_v40  ;;  %v208_v49 = vand.u32 4294901760, %v8173_v31  ;;  %v8211_v54 = vld [vmem:[%s8956_s1 + $0x8] sm:$0xff]  ;;  %v8218_v59 = vld [vmem:[%s8956_s1 + $0x10] sm:$0xff]  ;;  %v689_v60 = vld [vmem:[%s8958_s3 + $0x20] sm:$0xff] }
   0xc   :  { %v148_v51 = vand.u32 4294901760, %v147_v41  ;;  %v158_v52 = vand.u32 4294901760, %v157_v42  ;;  %7612 = vmatprep.subr.bf16.mxu0 %v7611_v38  ;;  %v167_v53 = vsub.f32 %v8181_v35, %v166_v44  ;;  %v690_v61 = vld [vmem:[%s8958_s3 + $0x28] sm:$0xff]  ;;  %49 = vperm.xlu0 %8014, %v39_v45   ;;  %v734_v0 = vand.u32 4294901760, %v8205_v50  ;;  %v8230_v1 = vld [vmem:[%s8956_s1 + $0x18] sm:$0xff]  ;;  %v691_v6 = vld [vmem:[%s8958_s3 + $0x30] sm:$0xff] }
   0xd   :  { %v7587_v55 = vpack.c.bf16 %v196_v46, %v189_v43  ;;  %v177_v56 = vsub.f32 %v8188_v39, %v176_v47  ;;  %v203_v57 = vand.u32 4294901760, %v202_v48  ;;  %v209_v58 = vsub.f32 %v8173_v31, %v208_v49  ;;  %v692_v11 = vld [vmem:[%s8958_s3 + $0x38] sm:$0xff]  ;;  %s8064_s14 = smov [#allocation2]  }
   0xe   :  { %6981 = vmatprep.mubr.f32.mxu1 %v148_v51  ;;  %7024 = vmatmul.mubr.f32.vlgmr.msra.gmra.mrb[0].mxu0 %v156_v33  ;;  %v168_v62 = vand.u32 4294901760, %v167_v53  ;;  %v7615_v63 = vpack.c.bf16 %v208_v49, %v201_v40  ;;  %v7595_v4 = vpack.c.bf16 %v8148_v20, %v8144_v18  ;;  %v737_v5 = vand.u32 4294901760, %v8211_v54 }
   0xf   :  { %6982 = vmatmul.mubr.f32.vlgmr.msra.gmra.mrb[0].mxu1 %v158_v52  ;;  %7588 = vmatprep.subr.bf16.mxu1 %v7587_v55  ;;  %v178_v2 = vand.u32 4294901760, %v177_v56  ;;  %v210_v3 = vand.u32 4294901760, %v209_v58  ;;  %v740_v7 = vand.u32 4294901760, %v8218_v59  ;;  %v722_v8 = vsel %vm62_vm0, %v689_v60, 0  ;;  %v1351_v56 = vld [vmem:[%s8957_s2] sm:$0xff]  ;;  %v1353_v58 = vld [vmem:[%s8957_s2 + $0x10] sm:$0xff] }
  0x10   :  { %7590 = vmatpush3.bf16.msra.mxu1 %v7587_v55  ;;  %7614 = vmatpush3.bf16.msra.mxu0 %v7611_v38  ;;  %v725_v9 = vsel %vm62_vm0, %v690_v61, 0  ;;  %v8244_v10 = vsub.f32 %v8205_v50, %v734_v0  ;;  %v743_v13 = vand.u32 4294901760, %v8230_v1  ;;  %v8250_v14 = vand.u32 4294901760, %v722_v8  ;;  %v1348_v50 = vld [vmem:[%s8958_s3 + $0x48] sm:$0xff] }
  0x11   :  { %6984 = vmatprep.mubr.f32.mxu1 %v168_v62  ;;  %7026 = vmatprep.mubr.f32.mxu0 %v166_v44  ;;  %v7591_v12 = vpack.c.bf16 %v210_v3, %v203_v57  ;;  %v8252_v18 = vand.u32 4294901760, %v725_v9  ;;  %v7599_v20 = vpack.c.bf16 %v8173_v31, %v8171_v30  ;;  %v8260_v22 = vsub.f32 %v8211_v54, %v737_v5  ;;  %v1352_v57 = vld [vmem:[%s8957_s2 + $0x8] sm:$0xff] }
  0x12   :  { %7027 = vmatmul.mubr.f32.gmra.mrb[2].mxu0 %v176_v47  ;;  %7616 = vmatprep.subr.bf16.mxu0 %v7615_v63  ;;  %v845_v21 = vand.u32 4294901760, %v8244_v10  ;;  %v728_v25 = vsel %vm62_vm0, %v691_v6, 0  ;;  %v8264_v27 = vsub.f32 %v722_v8, %v8250_v14  ;;  %v731_v30 = vsel %vm62_vm0, %v692_v11, 0 }
  0x13   :  { %6985 = vmatmul.mubr.f32.gmra.mrb[2].mxu1 %v178_v2  ;;  %7592 = vmatprep.subr.bf16.mxu1 %v7591_v12  ;;  %v8267_v28 = vsub.f32 %v725_v9, %v8252_v18  ;;  %v8269_v32 = vand.u32 4294901760, %v728_v25  ;;  %v852_v33 = vand.u32 4294901760, %v8260_v22  ;;  %v8276_v34 = vand.u32 4294901760, %v731_v30 }
  0x14   :  { %7594 = vmatpush3.bf16.msra.mxu1 %v7591_v12  ;;  %7618 = vmatpush3.bf16.msra.mxu0 %v7615_v63  ;;  %v846_v31 = vsub.f32 %v8244_v10, %v845_v21  ;;  %v8279_v36 = vsub.f32 %v8218_v59, %v740_v7  ;;  %v804_v37 = vand.u32 4294901760, %v8264_v27  ;;  %v8289_v41 = vsub.f32 %v8230_v1, %v743_v13  ;;  %v1354_v63 = vld [vmem:[%s8957_s2 + $0x18] sm:$0xff]  ;;  %v1347_v1 = vld [vmem:[%s8958_s3 + $0x40] sm:$0xff] }
  0x15   :  { %6995 = vmatprep.mubr.f32.mxu1 %v8140_v16  ;;  %7037 = vmatprep.mubr.f32.mxu0 %v8140_v16  ;;  %v814_v38 = vand.u32 4294901760, %v8267_v28  ;;  %v8286_v40 = vsub.f32 %v728_v25, %v8269_v32  ;;  %v853_v43 = vsub.f32 %v8260_v22, %v852_v33  ;;  %v8296_v44 = vsub.f32 %v731_v30, %v8276_v34 }
  0x16   :  { %7596 = vmatprep.subr.bf16.mxu1 %v7595_v4  ;;  %7620 = vmatprep.subr.bf16.mxu0 %v8138_v15  ;;  %v847_v42 = vand.u32 4294901760, %v846_v31  ;;  %v859_v45 = vand.u32 4294901760, %v8279_v36  ;;  %v8304_v46 = vsub.f32 %v8264_v27, %v804_v37  ;;  %v866_v49 = vand.u32 4294901760, %v8289_v41  ;;  %v41_v31 = vld [vmem:[%s8959_s4 + $0x18] sm:$0xff] }
  0x17   :  { %6996 = vmatmul.mubr.f32.vlgmr.msra.gmra.mrb[0].mxu1 %v8142_v17  ;;  %7038 = vmatmul.mubr.f32.vlgmr.msra.gmra.mrb[0].mxu0 %v8142_v17  ;;  %v8309_v47 = vsub.f32 %v8267_v28, %v814_v38  ;;  %v824_v48 = vand.u32 4294901760, %v8286_v40  ;;  %v854_v51 = vand.u32 4294901760, %v853_v43  ;;  %v834_v52 = vand.u32 4294901760, %v8296_v44 }
  0x18   :  { %7598 = vmatpush3.bf16.msra.mxu1 %v7595_v4  ;;  %7622 = vmatpush3.bf16.msra.mxu0 %v8138_v15  ;;  %v860_v53 = vsub.f32 %v8279_v36, %v859_v45  ;;  %v867_v15 = vsub.f32 %v8289_v41, %v866_v49  ;;  %v8342_v59 = vpack.c.bf16 %v737_v5, %v734_v0  ;;  %v806_v61 = vand.u32 4294901760, %v8304_v46  ;;  %v40_v4 = vld [vmem:[%s8959_s4 + $0x10] sm:$0xff] }
  0x19   :  { %6998 = vmatprep.mubr.f32.mxu1 %v8161_v26  ;;  %7040 = vmatprep.mubr.f32.mxu0 %v8161_v26  ;;  %v8323_v55 = vsub.f32 %v8286_v40, %v824_v48  ;;  %v8344_v60 = vpack.c.bf16 %v743_v13, %v740_v7  ;;  %v816_v54 = vand.u32 4294901760, %v8309_v47  ;;  %v8359_v0 = vpack.c.bf16 %v854_v51, %v847_v42 }
  0x1a   :  { %7600 = vmatprep.subr.bf16.mxu1 %v7599_v20  ;;  %7624 = vmatprep.subr.bf16.mxu0 %v8146_v19  ;;  %v861_v62 = vand.u32 4294901760, %v860_v53  ;;  %v8364_v2 = vsub.f32 %v8296_v44, %v834_v52  ;;  %v868_v3 = vand.u32 4294901760, %v867_v15  ;;  %v1392_v6 = vand.u32 4294901760, %v1351_v56 }
  0x1b   :  { %6999 = vmatmul.mubr.f32.gmra.mrb[2].mxu1 %v8169_v29  ;;  %7041 = vmatmul.mubr.f32.gmra.mrb[2].mxu0 %v8169_v29  ;;  %v826_v5 = vand.u32 4294901760, %v8323_v55  ;;  %v1395_v7 = vand.u32 4294901760, %v1352_v57  ;;  %v1398_v8 = vand.u32 4294901760, %v1353_v58  ;;  %v1401_v11 = vand.u32 4294901760, %v1354_v63 }
  0x1c   :  { %7602 = vmatpush3.bf16.msra.mxu1 %v7599_v20  ;;  %7626 = vmatpush3.bf16.msra.mxu0 %v8146_v19  ;;  %v8373_v9 = vpack.c.bf16 %v868_v3, %v861_v62  ;;  %v1380_v12 = vsel %vm62_vm0, %v1347_v1, 0  ;;  %v1383_v13 = vsel %vm62_vm0, %v1348_v50, 0  ;;  %v1349_v19 = vld [vmem:[%s8958_s3 + $0x50] sm:$0xff]  ;;  %v1350_v20 = vld [vmem:[%s8958_s3 + $0x58] sm:$0xff]  ;;  %v8390_v30 = vsub.f32 %v1351_v56, %v1392_v6  ;;  %s6637_s3 = sshll.u32 %s8064_s14, 4  ;;  %s6638_s3 = int_to_ptr.vmem [resolvable:$true] %s6637_s3 }
  0x1d   :  { %7009 = vmatprep.mubr.f32.mxu1 %v8155_v23  ;;  %7051 = vmatprep.mubr.f32.mxu0 %v8140_v16  ;;  %v8384_v23 = vpack.c.bf16 %v1395_v7, %v1392_v6  ;;  %v8386_v16 = vand.u32 4294901760, %v1380_v12  ;;  %v8388_v25 = vand.u32 4294901760, %v1383_v13  ;;  %v8397_v42 = vpack.c.bf16 %v1401_v11, %v1398_v8  ;;  %s8036_s15 = scalar_lea.vmem %s6638_s3, 256  ;;  %p8041_p1 = scmp.lt.s32.totalorder %s6638_s3, %s6638_s3 }
  0x1e   :  { %7628 = vmatprep.subr.bf16.mxu1 %v8342_v59  ;;  %54 = vperm.xlu0 %8014, %v40_v4   ;;  %v8399_v43 = vsub.f32 %v1352_v57, %v1395_v7  ;;  %v1386_v51 = vsel %vm62_vm0, %v1349_v19, 0  ;;  %v1389_v53 = vsel %vm62_vm0, %v1350_v20, 0  ;;  %v1503_v15 = vand.u32 4294901760, %v8390_v30  ;;  %p8037_p0 = scmp.ne.s32.totalorder %s6638_s3, %s8036_s15  ;;  %p8042_p2 = scmp.lt.s32.totalorder %s8036_s15, %s8036_s15 }
  0x1f   :  { %7010 = vmatmul.mubr.f32.vlgmr.msra.gmra.mrb[0].mxu1 %v8158_v24  ;;  %7052 = vmatmul.mubr.f32.vlgmr.msra.gmra.mrb[0].mxu0 %v8142_v17  ;;  %v8406_v24 = vsub.f32 %v1380_v12, %v8386_v16  ;;  %v8409_v17 = vsub.f32 %v1383_v13, %v8388_v25  ;;  %v8412_v56 = vand.u32 4294901760, %v1386_v51  ;;  %v8417_v62 = vand.u32 4294901760, %v1389_v53 }
  0x20   :  { %7630 = vmatpush3.bf16.msra.mxu1 %v8342_v59  ;;  %7012 = vmatprep.mubr.f32.mxu1 %v8181_v35  ;;  %v1510_v57 = vand.u32 4294901760, %v8399_v43  ;;  %v8419_v1 = vsub.f32 %v1353_v58, %v1398_v8  ;;  %v8421_v35 = vsub.f32 %v1354_v63, %v1401_v11  ;;  %v698_v58 = vld [vmem:[%s8959_s4 + $0x28] sm:$0xff]  ;;  %v7647_v55 = vpack.c.bf16 %v8289_v41, %v8279_v36  ;;  %p8043_p3 = por %p8042_p2, %p8041_p1 }
  0x21   :  { %7054 = vmatprep.mubr.f32.mxu0 %v8161_v26  ;;  %7632 = vmatprep.subr.bf16.mxu1 %v8344_v60  ;;  %v1462_v50 = vand.u32 4294901760, %v8406_v24  ;;  %v1472_v3 = vand.u32 4294901760, %v8409_v17  ;;  %v1504_v26 = vsub.f32 %v8390_v30, %v1503_v15  ;;  %v8430_v4 = vsub.f32 %v1386_v51, %v8412_v56 }
  0x22   :  { %59 = vperm.xlu0 %8014, %v41_v31   ;;  %7676 = vmatprep.subr.bf16.mxu0 %v8384_v23  ;;  %v1511_v63 = vsub.f32 %v8399_v43, %v1510_v57  ;;  %v8441_v6 = vsub.f32 %v1389_v53, %v8417_v62  ;;  %v1517_v7 = vand.u32 4294901760, %v8419_v1  ;;  %v1524_v8 = vand.u32 4294901760, %v8421_v35  ;;  %p8044_p4 = pnand %p8043_p3, %p8037_p0 }
  0x23   :  { %7013 = vmatmul.mubr.f32.gmra.mrb[2].mxu1 %v8188_v39  ;;  %7055 = vmatmul.mubr.f32.gmra.mrb[2].mxu0 %v8169_v29  ;;  %v1463_v29 = vsub.f32 %v8406_v24, %v1462_v50  ;;  %v1473_v39 = vsub.f32 %v8409_v17, %v1472_v3  ;;  %v1505_v11 = vand.u32 4294901760, %v1504_v26  ;;  %v1482_v12 = vand.u32 4294901760, %v8430_v4 }
  0x24   :  { %7634 = vmatpush3.bf16.msra.mxu1 %v8344_v60  ;;  %7065 = vmatprep.mubr.f32.mxu1 %v806_v61  ;;  %v1512_v13 = vand.u32 4294901760, %v1511_v63  ;;  %v1492_v19 = vand.u32 4294901760, %v8441_v6  ;;  %v1518_v46 = vsub.f32 %v8419_v1, %v1517_v7  ;;  %v1525_v61 = vsub.f32 %v8421_v35, %v1524_v8 }
  0x25   :  { %7636 = vmatprep.subr.bf16.mxu1 %v8359_v0  ;;  %7678 = vmatpush3.bf16.msra.mxu0 %v8384_v23  ;;  %v1464_v20 = vand.u32 4294901760, %v1463_v29  ;;  %v1483_v31 = vsub.f32 %v8430_v4, %v1482_v12  ;;  %v836_v51 = vand.u32 4294901760, %v8364_v2  ;;  %v1474_v29 = vand.u32 4294901760, %v1473_v39  ;;  %v1358_v39 = vld [vmem:[%s8959_s4 + $0x58] sm:$0xff] }
  0x26   :  { %708 = vperm.xlu0 %8014, %v698_v58   ;;  %7680 = vmatprep.subr.bf16.mxu0 %v8397_v42  ;;  %v7683_v53 = vpack.c.bf16 %v1512_v13, %v1505_v11  ;;  %v1519_v26 = vand.u32 4294901760, %v1518_v46  ;;  %v1526_v63 = vand.u32 4294901760, %v1525_v61  ;;  %v7643_v58 = vpack.c.bf16 %v8260_v22, %v8244_v10 }
  0x27   :  { %7066 = vmatmul.mubr.f32.vlgmr.msra.gmra.mrb[4].mxu1 %v816_v54  ;;  %v1493_v47 = vsub.f32 %v8441_v6, %v1492_v19  ;;  %7149 = vmatprep.mubr.f32.mxu0 %v1464_v20  ;;  %v1484_v54 = vand.u32 4294901760, %v1483_v31  ;;  %v7663_v10 = vpack.c.bf16 %v866_v49, %v859_v45  ;;  %vm2133_vm1 = vcmask 64512  }
  0x28   :  { %7638 = vmatpush3.bf16.msra.mxu1 %v8359_v0  ;;  %7068 = vmatprep.mubr.f32.mxu1 %v826_v5  ;;  %v7687_v0 = vpack.c.bf16 %v1526_v63, %v1519_v26  ;;  %v7691_v5 = vpack.c.bf16 %v8399_v43, %v8390_v30  ;;  %v700_v30 = vld [vmem:[%s8959_s4 + $0x38] sm:$0xff]  ;;  %vm8062_vm2 = vmmov 0   ;;  %vm4114_vm3 = vcmask 130048  }
  0x29   :  { %7640 = vmatprep.subr.bf16.mxu1 %v8373_v9  ;;  %7682 = vmatpush3.bf16.msra.mxu0 %v8397_v42  ;;  %v1494_v2 = vand.u32 4294901760, %v1493_v47 }
  0x2a   :  { %7684 = vmatprep.subr.bf16.mxu0 %v7683_v53 }
  0x2b   :  { %7069 = vmatmul.mubr.f32.gmra.mrb[6].mxu1 %v836_v51 }
  0x2c   :  { %7642 = vmatpush3.bf16.msra.mxu1 %v8373_v9  ;;  %7079 = vmatprep.mubr.f32.mxu1 %v8250_v14  ;;  %v7659_v9 = vpack.c.bf16 %v852_v33, %v845_v21  ;;  %v7695_v21 = vpack.c.bf16 %v8421_v35, %v8419_v1 }
  0x2d   :  { %7644 = vmatprep.subr.bf16.mxu1 %v7643_v58  ;;  %7150 = vmatmul.mubr.f32.vlgmr.msra.gmra.mrb[4].mxu0 %v1474_v29 }
  0x2e   :  { %7686 = vmatpush3.bf16.msra.mxu0 %v7683_v53  ;;  %7152 = vmatprep.mubr.f32.mxu0 %v1484_v54 }
  0x2f   :  { %7080 = vmatmul.mubr.f32.vlgmr.msra.gmra.mrb[4].mxu1 %v8252_v18  ;;  %7688 = vmatprep.subr.bf16.mxu0 %v7687_v0 }
  0x30   :  { %7646 = vmatpush3.bf16.msra.mxu1 %v7643_v58  ;;  %7082 = vmatprep.mubr.f32.mxu1 %v8269_v32 }
  0x31   :  { %7648 = vmatprep.subr.bf16.mxu1 %v7647_v55  ;;  %7153 = vmatmul.mubr.f32.gmra.mrb[6].mxu0 %v1494_v2 }
  0x32   :  { %7690 = vmatpush3.bf16.msra.mxu0 %v7687_v0  ;;  %7163 = vmatprep.mubr.f32.mxu0 %v8386_v16 }
  0x33   :  { %7083 = vmatmul.mubr.f32.gmra.mrb[6].mxu1 %v8276_v34  ;;  %7692 = vmatprep.subr.bf16.mxu0 %v7691_v5 }
  0x34   :  { %7650 = vmatpush3.bf16.msra.mxu1 %v7647_v55  ;;  %7093 = vmatprep.mubr.f32.mxu1 %v8264_v27 }
  0x35   :  { %7652 = vmatprep.subr.bf16.mxu1 %v8342_v59  ;;  %7164 = vmatmul.mubr.f32.vlgmr.msra.gmra.mrb[4].mxu0 %v8388_v25 }
  0x36   :  { %7694 = vmatpush3.bf16.msra.mxu0 %v7691_v5  ;;  %7166 = vmatprep.mubr.f32.mxu0 %v8412_v56 }
  0x37   :  { %7094 = vmatmul.mubr.f32.vlgmr.msra.gmra.mrb[4].mxu1 %v8267_v28  ;;  %7696 = vmatprep.subr.bf16.mxu0 %v7695_v21 }
  0x38   :  { %7654 = vmatpush3.bf16.msra.mxu1 %v8342_v59  ;;  %7096 = vmatprep.mubr.f32.mxu1 %v8286_v40 }
  0x39   :  { %7656 = vmatprep.subr.bf16.mxu1 %v8344_v60  ;;  %7167 = vmatmul.mubr.f32.gmra.mrb[6].mxu0 %v8417_v62 }
  0x3a   :  { %7177 = vmatprep.mubr.f32.mxu0 %v8406_v24  ;;  %7698 = vmatpush3.bf16.msra.mxu0 %v7695_v21 }
  0x3b   :  { %7097 = vmatmul.mubr.f32.gmra.mrb[6].mxu1 %v8296_v44  ;;  %7700 = vmatprep.subr.bf16.mxu0 %v8384_v23 }
  0x3c   :  { %7658 = vmatpush3.bf16.msra.mxu1 %v8344_v60  ;;  %7107 = vmatprep.mubr.f32.mxu1 %v804_v37 }
  0x3d   :  { %7660 = vmatprep.subr.bf16.mxu1 %v7659_v9  ;;  %7178 = vmatmul.mubr.f32.vlgmr.msra.gmra.mrb[4].mxu0 %v8409_v17 }
  0x3e   :  { %7702 = vmatpush3.bf16.msra.mxu0 %v8384_v23  ;;  %7180 = vmatprep.mubr.f32.mxu0 %v8430_v4 }
  0x3f   :  { %7108 = vmatmul.mubr.f32.vlgmr.msra.gmra.mrb[4].mxu1 %v814_v38  ;;  %7704 = vmatprep.subr.bf16.mxu0 %v8397_v42 }
  0x40   :  { %7662 = vmatpush3.bf16.msra.mxu1 %v7659_v9  ;;  %7110 = vmatprep.mubr.f32.mxu1 %v824_v48 }
  0x41   :  { %7664 = vmatprep.subr.bf16.mxu1 %v7663_v10  ;;  %7181 = vmatmul.mubr.f32.gmra.mrb[6].mxu0 %v8441_v6 }
  0x42   :  { %7706 = vmatpush3.bf16.msra.mxu0 %v8397_v42  ;;  %7191 = vmatprep.mubr.f32.mxu0 %v1462_v50 }
  0x43   :  { %7111 = vmatmul.mubr.f32.gmra.mrb[6].mxu1 %v834_v52 }
  0x44   :  { %7666 = vmatpush3.bf16.msra.mxu1 %v7663_v10  ;;  %7121 = vmatprep.mubr.f32.mxu1 %v8250_v14 }
  0x45   :  { %7668 = vmatprep.subr.bf16.mxu1 %v8342_v59  ;;  %7192 = vmatmul.mubr.f32.vlgmr.msra.gmra.mrb[4].mxu0 %v1472_v3  ;;  %v1355_v3 = vld [vmem:[%s8959_s4 + $0x40] sm:$0xff] }
  0x46   :  { %7194 = vmatprep.mubr.f32.mxu0 %v1482_v12  ;;  %v1356_v12 = vld [vmem:[%s8959_s4 + $0x48] sm:$0xff] }
  0x47   :  { %7122 = vmatmul.mubr.f32.vlgmr.msra.gmra.mrb[4].mxu1 %v8252_v18 }
  0x48   :  { %7670 = vmatpush3.bf16.msra.mxu1 %v8342_v59  ;;  %7124 = vmatprep.mubr.f32.mxu1 %v8269_v32 }
  0x49   :  { %7672 = vmatprep.subr.bf16.mxu1 %v8344_v60  ;;  %7195 = vmatmul.mubr.f32.gmra.mrb[6].mxu0 %v1492_v19 }
  0x4a   :  { %7205 = vmatprep.mubr.f32.mxu0 %v8386_v16 }
  0x4b   :  { %7125 = vmatmul.mubr.f32.gmra.mrb[6].mxu1 %v8276_v34 }
  0x4c   :  { %7674 = vmatpush3.bf16.msra.mxu1 %v8344_v60  ;;  %7135 = vmatprep.mubr.f32.mxu1 %v8250_v14  ;;  %v7707_v14 = vpack.c.bf16 %v1510_v57, %v1503_v15 }
  0x4e   :  { %7708 = vmatprep.subr.bf16.mxu0 %v7707_v14 }
  0x4f   :  { %7136 = vmatmul.mubr.f32.vlgmr.msra.gmra.mrb[4].mxu1 %v8252_v18  ;;  %v7711_v18 = vpack.c.bf16 %v1524_v8, %v1517_v7  ;;  %7710 = vmatpush3.bf16.msra.mxu0 %v7707_v14  ;;  %v1357_v7 = vld [vmem:[%s8959_s4 + $0x50] sm:$0xff] }
  0x50   :  { %7138 = vmatprep.mubr.f32.mxu1 %v8269_v32 }
  0x51   :  { %7712 = vmatprep.subr.bf16.mxu0 %v7711_v18 }
  0x53   :  { %7139 = vmatmul.mubr.f32.gmra.mrb[6].mxu1 %v8276_v34  ;;  %7714 = vmatpush3.bf16.msra.mxu0 %v7711_v18 }
  0x54   :  { %7716 = vmatprep.subr.bf16.mxu0 %v8384_v23 }
  0x56   :  { %7206 = vmatmul.mubr.f32.vlgmr.msra.gmra.mrb[4].mxu0 %v8388_v25 }
  0x57   :  { %7718 = vmatpush3.bf16.msra.mxu0 %v8384_v23  ;;  %7208 = vmatprep.mubr.f32.mxu0 %v8412_v56 }
  0x58   :  { %7720 = vmatprep.subr.bf16.mxu0 %v8397_v42 }
  0x5a   :  { %7209 = vmatmul.mubr.f32.gmra.mrb[6].mxu0 %v8417_v62 }
  0x5b   :  { %7722 = vmatpush3.bf16.msra.mxu0 %v8397_v42  ;;  %7219 = vmatprep.mubr.f32.mxu0 %v8386_v16 }
  0x5e   :  { %7220 = vmatmul.mubr.f32.vlgmr.msra.gmra.mrb[4].mxu0 %v8388_v25  ;;  %v699_v25 = vld [vmem:[%s8959_s4 + $0x30] sm:$0xff] }
  0x5f   :  { %7222 = vmatprep.mubr.f32.mxu0 %v8412_v56 }
  0x62   :  { %7223 = vmatmul.mubr.f32.gmra.mrb[6].mxu0 %v8417_v62 }
  0x83   :  { %v45_v22 = vpop.permute.xlu0 %44 }
  0x84   :  { %v704_v42 = vpop.permute.xlu1 %703 }
  0x8b   :  { %v50_v27 = vpop.permute.xlu0 %49 }
  0x9d   :  { %v55_v28 = vpop.permute.xlu0 %54 }
  0xa1   :  { %v60_v40 = vpop.permute.xlu0 %59 }
  0xa5   :  { %v709_v0 = vpop.permute.xlu0 %708 }
  0xf2   :  { %v7011_v32 = vpop.f32.mrb[0].mxu1  ;;  %v7053_v33 = vpop.f32.mrb[0].mxu0 }
  0xf3   :  { %v7843_v34 = vadd.f32 %v7011_v32, %v50_v27  ;;  %v369_v36 = vpop.f32.mrb[1].mxu1  ;;  %v667_v37 = vpop.f32.mrb[1].mxu0 }
  0xf4   :  { %v7845_v38 = vadd.f32 %v369_v36, %v45_v22 }
  0xf5   :  { %v7844_v41 = vadd.f32 %v7843_v34, %v7053_v33 }
  0xf6   :  { %v7846_v44 = vadd.f32 %v7845_v38, %v667_v37  ;;  %v7014_v45 = vpop.f32.mrb[2].mxu1  ;;  %v7056_v48 = vpop.f32.mrb[2].mxu0 }
  0xf7   :  { %v7847_v49 = vadd.f32 %v7014_v45, %v60_v40  ;;  %v679_v52 = vpop.f32.mrb[3].mxu0  ;;  %2037 = vxpose.xlu0.b32.start.end [1/1] (short) (narrow) %v7844_v41, 16  ;;  %v383_v59 = vpop.f32.mrb[3].mxu1 }
  0xf8   :  { %v7849_v60 = vadd.f32 %v383_v59, %v55_v28  ;;  %2005 = vxpose.xlu1.b32.start.end [1/1] (short) (narrow) %v7846_v44, 16 }
  0xf9   :  { %v7848_v23 = vadd.f32 %v7847_v49, %v7056_v48 }
  0xfa   :  { %v7850_v16 = vadd.f32 %v7849_v60, %v679_v52 }
 0x11a   :  { %713 = vperm.xlu1 %8015, %v699_v25  }
 0x122   :  { %v7137_v43 = vpop.f32.mrb[4].mxu1 }
 0x123   :  { %v1325_v24 = vpop.f32.mrb[5].mxu1  ;;  %v7851_v9 = vadd.f32 %v7137_v43, %v709_v0 }
 0x124   :  { %718 = vperm.xlu0 %8014, %v700_v30   ;;  %v7852_v17 = vadd.f32 %v1325_v24, %v704_v42 }
 0x125   :  { %v8616_v28 = vand.u32 4294901760, %v7851_v9 }
 0x126   :  { %v8574_v15 = vand.u32 4294901760, %v7852_v17  ;;  %v8576_v56 = vpop.f32.mrb[6].mxu1 }
 0x127   :  { %v1337_v57 = vpop.f32.mrb[7].mxu1  ;;  %v2723_v37 = vsub.f32 %v7851_v9, %v8616_v28 }
 0x128   :  { %v2228_v62 = vsub.f32 %v7852_v17, %v8574_v15  ;;  %7225 = vmatprep.subr.mxu1 %v8574_v15 }
 0x129   :  { %7226 = vmatpush3.msra.mxu1 %v8574_v15  ;;  %v2724_v44 = vand.u32 4294901760, %v2723_v37 }
 0x12a   :  { %v2229_v1 = vand.u32 4294901760, %v2228_v62 }
 0x12b   :  { %v2725_v49 = vsub.f32 %v2723_v37, %v2724_v44 }
 0x12c   :  { %v2230_v35 = vsub.f32 %v2228_v62, %v2229_v1 }
 0x12d   :  { %v2726_v60 = vand.u32 4294901760, %v2725_v49 }
 0x12e   :  { %v2231_v50 = vand.u32 4294901760, %v2230_v35 }
 0x130   :  { %7230 = vmatprep.subr.mxu1 %v2231_v50 }
 0x131   :  { %v8584_v4 = vpop.f32.mrb[4].mxu0 }
 0x132   :  { %v8586_v6 = vpop.f32.mrb[5].mxu0 }
 0x135   :  { %v8591_v8 = vpop.f32.mrb[6].mxu0 }
 0x136   :  { %v8596_v11 = vpop.f32.mrb[7].mxu0 }
 0x142   :  { %2101 = vxpose.xlu0.b32.start.end [1/1] (short) (narrow) %v7848_v23, 16 }
 0x143   :  { %2069 = vxpose.xlu1.b32.start.end [1/1] (short) (narrow) %v7850_v16, 16 }
 0x165   :  { %1361 = vperm.xlu1 %8015, %v1355_v3  }
 0x169   :  { %1371 = vperm.xlu1 %8015, %v1357_v7  }
 0x16d   :  { %1376 = vperm.xlu1 %8015, %v1358_v39  }
 0x16f   :  { %1366 = vperm.xlu0 %8014, %v1356_v12  }
 0x177   :  { %v2053_v55 = vpop.trf.xlu0 }
 0x178   :  { %v2021_v13 = vpop.trf.xlu1  ;;  %v2630_v21 = vsel %vm2133_vm1, %v2053_v55, 0 }
 0x179   :  { %v2135_v19 = vsel %vm2133_vm1, %v2021_v13, 0  ;;  %v8612_v22 = vand.u32 4294901760, %v2630_v21 }
 0x17a   :  { %v2206_v46 = vand.u32 4294901760, %v2135_v19 }
 0x17b   :  { %v2054_v18 = vpop.trf.xlu0  ;;  %v2702_v36 = vsub.f32 %v2630_v21, %v8612_v22  ;;  %v8063_v21 = vmov 0.0  }
 0x17c   :  { %v2207_v61 = vsub.f32 %v2135_v19, %v2206_v46  ;;  %v2022_v20 = vpop.trf.xlu1  ;;  %v2633_v27 = vsel %vm2133_vm1, %v2054_v18, 0 }
 0x17d   :  { %v2138_v31 = vsel %vm2133_vm1, %v2022_v20, 0  ;;  %v8621_v33 = vand.u32 4294901760, %v2633_v27  ;;  %v2703_v41 = vand.u32 4294901760, %v2702_v36 }
 0x17e   :  { %v2208_v51 = vand.u32 4294901760, %v2207_v61  ;;  %v2216_v53 = vand.u32 4294901760, %v2138_v31 }
 0x17f   :  { %v2712_v40 = vsub.f32 %v2633_v27, %v8621_v33  ;;  %v2704_v48 = vsub.f32 %v2702_v36, %v2703_v41 }
 0x180   :  { %v2217_v26 = vsub.f32 %v2138_v31, %v2216_v53  ;;  %v2209_v63 = vsub.f32 %v2207_v61, %v2208_v51 }
 0x181   :  { %v2713_v45 = vand.u32 4294901760, %v2712_v40  ;;  %v2705_v59 = vand.u32 4294901760, %v2704_v48 }
 0x182   :  { %v2218_v58 = vand.u32 4294901760, %v2217_v26  ;;  %v2210_v29 = vand.u32 4294901760, %v2209_v63 }
 0x183   :  { %v2714_v52 = vsub.f32 %v2712_v40, %v2713_v45 }
 0x184   :  { %v2219_v47 = vsub.f32 %v2217_v26, %v2218_v58  ;;  %7227 = vmatprep.mubr.f32.mxu1 %v2210_v29 }
 0x185   :  { %v2715_v23 = vand.u32 4294901760, %v2714_v52 }
 0x186   :  { %v2220_v54 = vand.u32 4294901760, %v2219_v47 }
 0x188   :  { %7228 = vmatmul.mubr.f32.vlgmr.msra.gmra.mrb[8].mxu1 %v2220_v54 }
 0x189   :  { %7231 = vmatpush3.msra.mxu1 %v2231_v50  ;;  %7232 = vmatprep.mubr.f32.mxu1 %v2206_v46 }
 0x18a   :  { %7235 = vmatprep.subr.mxu1 %v2228_v62 }
 0x190   :  { %7233 = vmatmul.mubr.f32.vlgmr.msra.gmra.mrb[8].mxu1 %v2216_v53 }
 0x191   :  { %7236 = vmatpush3.msra.mxu1 %v2228_v62  ;;  %7237 = vmatprep.mubr.f32.mxu1 %v2207_v61 }
 0x192   :  { %7240 = vmatprep.subr.mxu1 %v8574_v15 }
 0x198   :  { %7238 = vmatmul.mubr.f32.vlgmr.msra.gmra.mrb[8].mxu1 %v2217_v26 }
 0x199   :  { %7241 = vmatpush3.msra.mxu1 %v8574_v15  ;;  %v714_v2 = vpop.permute.xlu1 %713  ;;  %7242 = vmatprep.mubr.f32.mxu1 %v2208_v51 }
 0x19a   :  { %v7854_v5 = vadd.f32 %v1337_v57, %v714_v2  ;;  %7245 = vmatprep.subr.mxu1 %v2229_v1 }
 0x19c   :  { %v8605_v10 = vand.u32 4294901760, %v7854_v5 }
 0x19e   :  { %v8609_v14 = vsub.f32 %v7854_v5, %v8605_v10  ;;  %7285 = vmatprep.subr.mxu0 %v8605_v10  ;;  %v8061_v5 = vmov 0.0|0.0  }
 0x19f   :  { %7286 = vmatpush3.msra.mxu0 %v8605_v10 }
 0x1a0   :  { %7243 = vmatmul.mubr.f32.vlgmr.msra.gmra.mrb[8].mxu1 %v2218_v58  ;;  %v8619_v32 = vand.u32 4294901760, %v8609_v14 }
 0x1a1   :  { %7246 = vmatpush3.msra.mxu1 %v2229_v1  ;;  %7247 = vmatprep.mubr.f32.mxu1 %v2206_v46 }
 0x1a2   :  { %7250 = vmatprep.subr.mxu1 %v8574_v15  ;;  %v3220_v34 = vsub.f32 %v8609_v14, %v8619_v32 }
 0x1a3   :  { %v719_v16 = vpop.permute.xlu0 %718 }
 0x1a4   :  { %v8628_v38 = vand.u32 4294901760, %v3220_v34  ;;  %v7853_v62 = vadd.f32 %v8576_v56, %v719_v16 }
 0x1a6   :  { %7290 = vmatprep.subr.mxu0 %v8628_v38  ;;  %v8652_v13 = vand.u32 4294901760, %v7853_v62 }
 0x1a8   :  { %7248 = vmatmul.mubr.f32.vlgmr.msra.gmra.mrb[8].mxu1 %v2216_v53  ;;  %v3713_v31 = vsub.f32 %v7853_v62, %v8652_v13 }
 0x1a9   :  { %7251 = vmatpush3.msra.mxu1 %v8574_v15  ;;  %7252 = vmatprep.mubr.f32.mxu1 %v2206_v46 }
 0x1aa   :  { %7255 = vmatprep.subr.mxu1 %v8616_v28  ;;  %v3714_v63 = vand.u32 4294901760, %v3713_v31 }
 0x1ac   :  { %v3715_v47 = vsub.f32 %v3713_v31, %v3714_v63 }
 0x1ae   :  { %v3716_v55 = vand.u32 4294901760, %v3715_v47 }
 0x1b0   :  { %7253 = vmatmul.mubr.f32.vlgmr.msra.gmra.mrb[8].mxu1 %v2216_v53 }
 0x1b1   :  { %7256 = vmatpush3.msra.mxu1 %v8616_v28  ;;  %7257 = vmatprep.mubr.f32.mxu1 %v2705_v59 }
 0x1b2   :  { %7260 = vmatprep.subr.mxu1 %v2726_v60 }
 0x1b4   :  { %7258 = vmatmul.mubr.f32.vlgmr.msra.gmra.mrb[10].mxu1 %v2715_v23 }
 0x1b5   :  { %7261 = vmatpush3.msra.mxu1 %v2726_v60  ;;  %7262 = vmatprep.mubr.f32.mxu1 %v8612_v22 }
 0x1b6   :  { %7265 = vmatprep.subr.mxu1 %v2723_v37 }
 0x1bc   :  { %7263 = vmatmul.mubr.f32.vlgmr.msra.gmra.mrb[10].mxu1 %v8621_v33 }
 0x1bd   :  { %7266 = vmatpush3.msra.mxu1 %v2723_v37  ;;  %7267 = vmatprep.mubr.f32.mxu1 %v2702_v36 }
 0x1be   :  { %7270 = vmatprep.subr.mxu1 %v8616_v28 }
 0x1c2   :  { %v2117_v25 = vpop.trf.xlu0 }
 0x1c3   :  { %v2085_v30 = vpop.trf.xlu1  ;;  %v3620_v50 = vsel %vm2133_vm1, %v2117_v25, 0 }
 0x1c4   :  { %v3125_v42 = vsel %vm2133_vm1, %v2085_v30, 0  ;;  %7268 = vmatmul.mubr.f32.vlgmr.msra.gmra.mrb[10].mxu1 %v2712_v40  ;;  %v8650_v12 = vand.u32 4294901760, %v3620_v50 }
 0x1c5   :  { %v8639_v43 = vand.u32 4294901760, %v3125_v42  ;;  %7271 = vmatpush3.msra.mxu1 %v8616_v28  ;;  %7272 = vmatprep.mubr.f32.mxu1 %v2703_v41 }
 0x1c6   :  { %7275 = vmatprep.subr.mxu1 %v2724_v44  ;;  %v2118_v57 = vpop.trf.xlu0  ;;  %v3692_v20 = vsub.f32 %v3620_v50, %v8650_v12 }
 0x1c7   :  { %v3197_v24 = vsub.f32 %v3125_v42, %v8639_v43  ;;  %v2086_v17 = vpop.trf.xlu1  ;;  %v3623_v7 = vsel %vm2133_vm1, %v2118_v57, 0 }
 0x1c8   :  { %v3128_v15 = vsel %vm2133_vm1, %v2086_v17, 0  ;;  %v3701_v46 = vand.u32 4294901760, %v3623_v7  ;;  %v3693_v26 = vand.u32 4294901760, %v3692_v20 }
 0x1c9   :  { %v3198_v1 = vand.u32 4294901760, %v3197_v24  ;;  %v8645_v35 = vand.u32 4294901760, %v3128_v15 }
 0x1ca   :  { %v3702_v53 = vsub.f32 %v3623_v7, %v3701_v46  ;;  %v3694_v29 = vsub.f32 %v3692_v20, %v3693_v26 }
 0x1cb   :  { %v3207_v3 = vsub.f32 %v3128_v15, %v8645_v35  ;;  %v3199_v39 = vsub.f32 %v3197_v24, %v3198_v1 }
 0x1cc   :  { %7273 = vmatmul.mubr.f32.vlgmr.msra.gmra.mrb[10].mxu1 %v2713_v45  ;;  %v3703_v58 = vand.u32 4294901760, %v3702_v53  ;;  %v3695_v0 = vand.u32 4294901760, %v3694_v29 }
 0x1cd   :  { %v3208_v19 = vand.u32 4294901760, %v3207_v3  ;;  %7276 = vmatpush3.msra.mxu1 %v2724_v44  ;;  %7277 = vmatprep.mubr.f32.mxu1 %v8612_v22  ;;  %v3200_v56 = vand.u32 4294901760, %v3199_v39 }
 0x1ce   :  { %7280 = vmatprep.subr.mxu1 %v8616_v28  ;;  %v3704_v54 = vsub.f32 %v3702_v53, %v3703_v58 }
 0x1cf   :  { %v3209_v61 = vsub.f32 %v3207_v3, %v3208_v19  ;;  %7287 = vmatprep.mubr.f32.mxu0 %v3200_v56 }
 0x1d0   :  { %v3705_v2 = vand.u32 4294901760, %v3704_v54 }
 0x1d1   :  { %v3210_v51 = vand.u32 4294901760, %v3209_v61 }
 0x1d3   :  { %7288 = vmatmul.mubr.f32.vlgmr.msra.gmra.mrb[8].mxu0 %v3210_v51 }
 0x1d4   :  { %7291 = vmatpush3.msra.mxu0 %v8628_v38  ;;  %7278 = vmatmul.mubr.f32.vlgmr.msra.gmra.mrb[10].mxu1 %v8621_v33 }
 0x1d5   :  { %7281 = vmatpush3.msra.mxu1 %v8616_v28  ;;  %7292 = vmatprep.mubr.f32.mxu0 %v8639_v43 }
 0x1d6   :  { %7295 = vmatprep.subr.mxu0 %v8609_v14  ;;  %7282 = vmatprep.mubr.f32.mxu1 %v8612_v22 }
 0x1d7   :  { %7315 = vmatprep.subr.mxu1 %v8652_v13 }
 0x1db   :  { %7293 = vmatmul.mubr.f32.vlgmr.msra.gmra.mrb[8].mxu0 %v8645_v35 }
 0x1dc   :  { %7296 = vmatpush3.msra.mxu0 %v8609_v14  ;;  %7283 = vmatmul.mubr.f32.vlgmr.msra.gmra.mrb[10].mxu1 %v8621_v33 }
 0x1dd   :  { %7297 = vmatprep.mubr.f32.mxu0 %v3197_v24  ;;  %7300 = vmatprep.subr.mxu0 %v8605_v10 }
 0x1de   :  { %7316 = vmatpush3.msra.mxu1 %v8652_v13  ;;  %7317 = vmatprep.mubr.f32.mxu1 %v3695_v0 }
 0x1df   :  { %7320 = vmatprep.subr.mxu1 %v3716_v55 }
 0x1e0   :  { %7318 = vmatmul.mubr.f32.vlgmr.msra.gmra.mrb[12].mxu1 %v3705_v2 }
 0x1e1   :  { %7321 = vmatpush3.msra.mxu1 %v3716_v55  ;;  %7322 = vmatprep.mubr.f32.mxu1 %v8650_v12 }
 0x1e2   :  { %7325 = vmatprep.subr.mxu1 %v3713_v31 }
 0x1e3   :  { %7298 = vmatmul.mubr.f32.vlgmr.msra.gmra.mrb[8].mxu0 %v3207_v3 }
 0x1e4   :  { %7301 = vmatpush3.msra.mxu0 %v8605_v10  ;;  %7302 = vmatprep.mubr.f32.mxu0 %v3198_v1  ;;  %v1362_v39 = vpop.permute.xlu1 %1361 }
 0x1e5   :  { %7305 = vmatprep.subr.mxu0 %v8619_v32 }
 0x1e8   :  { %7323 = vmatmul.mubr.f32.vlgmr.msra.gmra.mrb[12].mxu1 %v3701_v46 }
 0x1e9   :  { %7326 = vmatpush3.msra.mxu1 %v3713_v31  ;;  %7327 = vmatprep.mubr.f32.mxu1 %v3692_v20 }
 0x1ea   :  { %7330 = vmatprep.subr.mxu1 %v8652_v13 }
 0x1eb   :  { %7303 = vmatmul.mubr.f32.vlgmr.msra.gmra.mrb[8].mxu0 %v3208_v19  ;;  %v7856_v19 = vadd.f32 %v8586_v6, %v1362_v39 }
 0x1ec   :  { %7306 = vmatpush3.msra.mxu0 %v8619_v32  ;;  %7307 = vmatprep.mubr.f32.mxu0 %v8639_v43 }
 0x1ed   :  { %7310 = vmatprep.subr.mxu0 %v8605_v10 }
 0x1f0   :  { %7328 = vmatmul.mubr.f32.vlgmr.msra.gmra.mrb[12].mxu1 %v3702_v53 }
 0x1f1   :  { %7331 = vmatpush3.msra.mxu1 %v8652_v13  ;;  %7332 = vmatprep.mubr.f32.mxu1 %v3693_v26 }
 0x1f2   :  { %7335 = vmatprep.subr.mxu1 %v3714_v63 }
 0x1f3   :  { %7308 = vmatmul.mubr.f32.vlgmr.msra.gmra.mrb[8].mxu0 %v8645_v35 }
 0x1f4   :  { %7311 = vmatpush3.msra.mxu0 %v8605_v10  ;;  %7312 = vmatprep.mubr.f32.mxu0 %v8639_v43 }
 0x1f5   :  { %7723 = vmatprep.subr.bf16.mxu0 %v8061_v5 }
 0x1f8   :  { %7333 = vmatmul.mubr.f32.vlgmr.msra.gmra.mrb[12].mxu1 %v3703_v58 }
 0x1f9   :  { %7336 = vmatpush3.msra.mxu1 %v3714_v63  ;;  %7337 = vmatprep.mubr.f32.mxu1 %v8650_v12  ;;  %v4182_v63 = vsel %vm4114_vm3, %v7856_v19, 0 }
 0x1fa   :  { %7340 = vmatprep.subr.mxu1 %v8652_v13 }
 0x1fb   :  { %7313 = vmatmul.mubr.f32.vlgmr.msra.gmra.mrb[8].mxu0 %v8645_v35 }
 0x1fc   :  { %7349 = vmatprep.mubr.msk.f32.mxu0 %vm8062_vm2, %v8063_v21 }
 0x200   :  { %7338 = vmatmul.mubr.f32.vlgmr.msra.gmra.mrb[12].mxu1 %v3701_v46 }
 0x201   :  { %7341 = vmatpush3.msra.mxu1 %v8652_v13  ;;  %7342 = vmatprep.mubr.f32.mxu1 %v8650_v12  ;;  %v1367_v12 = vpop.permute.xlu0 %1366 }
 0x202   :  { %7741 = vmatprep.subr.bf16.mxu1 %v8061_v5  ;;  %v7855_v56 = vadd.f32 %v8584_v4, %v1367_v12 }
 0x204   :  { %v4650_v58 = vsel %vm4114_vm3, %v7855_v56, 0 }
 0x208   :  { %7343 = vmatmul.mubr.f32.vlgmr.msra.gmra.mrb[12].mxu1 %v3701_v46 }
 0x209   :  { %7391 = vmatprep.mubr.msk.f32.mxu1 %vm8062_vm2, %v8063_v21 }
 0x283   :  { %v7254_v9 = vpop.f32.mrb[8].mxu1 }
 0x284   :  { %v2619_v10 = vpop.f32.mrb[9].mxu1  ;;  %v4122_v27 = vsel %vm4114_vm3, %v7254_v9, -inf }
 0x285   :  { %v4115_v33 = vsel %vm4114_vm3, %v2619_v10, -inf }
 0x2af   :  { %v7284_v14 = vpop.f32.mrb[10].mxu1 }
 0x2b0   :  { %v3114_v18 = vpop.f32.mrb[11].mxu1  ;;  %v4123_v40 = vsel %vm4114_vm3, %v7284_v14, -inf }
 0x2b1   :  { %v4116_v45 = vsel %vm4114_vm3, %v3114_v18, -inf }
 0x2ce   :  { %v7314_v22 = vpop.f32.mrb[8].mxu0 }
 0x2cf   :  { %v4124_v28 = vsel %vm4114_vm3, %v7314_v22, -inf  ;;  %v3609_v32 = vpop.f32.mrb[9].mxu0 }
 0x2d0   :  { %v4125_v34 = vmax.f32 %v4122_v27, %v4124_v28  ;;  %v4117_v36 = vsel %vm4114_vm3, %v3609_v32, -inf }
 0x2d1   :  { %v4118_v37 = vmax.f32 %v4115_v33, %v4117_v36 }
 0x2db   :  { %v7344_v38 = vpop.f32.mrb[12].mxu1 }
 0x2dc   :  { %v4126_v41 = vsel %vm4114_vm3, %v7344_v38, -inf  ;;  %v4104_v44 = vpop.f32.mrb[13].mxu1 }
 0x2dd   :  { %v4127_v48 = vmax.f32 %v4123_v40, %v4126_v41  ;;  %v4119_v49 = vsel %vm4114_vm3, %v4104_v44, -inf }
 0x2de   :  { %v4120_v52 = vmax.f32 %v4116_v45, %v4119_v49 }
 0x2df   :  { %v4128_v59 = vmax.f32 %v4125_v34, %v4127_v48  ;;  %v4167_v48 = vld [vmem:[%s8962_s7] sm:$0xff] }
 0x2e0   :  { %v4121_v60 = vmax.f32 %v4118_v37, %v4120_v52 }
 0x2e1   :  { %v4130_v23 = vsub.f32 %v7254_v9, %v4128_v59  ;;  %v4132_v16 = vsub.f32 %v7284_v14, %v4128_v59  ;;  %v4134_v25 = vsub.f32 %v7314_v22, %v4128_v59  ;;  %v4136_v30 = vsub.f32 %v7344_v38, %v4128_v59  ;;  %v4168_v38 = vld [vmem:[%s8962_s7 + $0x8] sm:$0xff] }
 0x2e2   :  { %v4129_v42 = vsub.f32 %v2619_v10, %v4121_v60  ;;  %v4131_v43 = vsub.f32 %v3114_v18, %v4121_v60  ;;  %v4133_v24 = vsub.f32 %v3609_v32, %v4121_v60  ;;  %v4135_v17 = vsub.f32 %v4104_v44, %v4121_v60 }
 0x2e3   :  { %v4139_v15 = vmul.f32 1.442695, %v4130_v23  ;;  %v4143_v57 = vmul.f32 1.442695, %v4132_v16  ;;  %v4147_v62 = vmul.f32 1.442695, %v4134_v25 }
 0x2e4   :  { %v4151_v1 = vmul.f32 1.442695, %v4136_v30  ;;  %v4137_v35 = vmul.f32 1.442695, %v4129_v42  ;;  %v4141_v50 = vmul.f32 1.442695, %v4131_v43 }
 0x2e5   :  { %8016 = vpow2.f32 %v4139_v15  ;;  %v4145_v3 = vmul.f32 1.442695, %v4133_v24  ;;  %v4149_v7 = vmul.f32 1.442695, %v4135_v17  ;;  %v8710_v9 = vand.u32 4294901760, %v4182_v63 }
 0x2e6   :  { %8018 = vpow2.f32 %v4143_v57  ;;  %v8712_v10 = vand.u32 4294901760, %v4650_v58 }
 0x2e7   :  { %8020 = vpow2.f32 %v4147_v62  ;;  %v8717_v32 = vsub.f32 %v4182_v63, %v8710_v9 }
 0x2e8   :  { %8022 = vpow2.f32 %v4151_v1  ;;  %v8720_v33 = vsub.f32 %v4650_v58, %v8712_v10 }
 0x2e9   :  { %8024 = vpow2.f32 %v4137_v35  ;;  %v4259_v36 = vand.u32 4294901760, %v8717_v32 }
 0x2ea   :  { %8026 = vpow2.f32 %v4141_v50  ;;  %v4727_v37 = vand.u32 4294901760, %v8720_v33 }
 0x2eb   :  { %8028 = vpow2.f32 %v4145_v3  ;;  %v8730_v41 = vsub.f32 %v8717_v32, %v4259_v36 }
 0x2ec   :  { %8030 = vpow2.f32 %v4149_v7  ;;  %v8735_v44 = vsub.f32 %v8720_v33, %v4727_v37 }
 0x2ed   :  { %v4261_v16 = vand.u32 4294901760, %v8730_v41  ;;  %v1372_v41 = vpop.permute.xlu1 %1371 }
 0x2ee   :  { %v4729_v25 = vand.u32 4294901760, %v8735_v44 }
 0x2ef   :  { %v8017_v13 = vpop.eup %8016 }
 0x2f0   :  { %v8019_v46 = vpop.eup %8018  ;;  %v4160_v61 = vsel %vm4114_vm3, %v8017_v13, 0.0 }
 0x2f1   :  { %v8021_v20 = vpop.eup %8020  ;;  %v4161_v31 = vsel %vm4114_vm3, %v8019_v46, 0.0  ;;  %v1377_v44 = vpop.permute.xlu1 %1376 }
 0x2f2   :  { %v8023_v51 = vpop.eup %8022  ;;  %v4162_v53 = vadd.f32 %v4161_v31, %v4160_v61  ;;  %v4163_v29 = vsel %vm4114_vm3, %v8021_v20, 0.0 }
 0x2f3   :  { %v8025_v26 = vpop.eup %8024  ;;  %v4165_v0 = vsel %vm4114_vm3, %v8023_v51, 0.0 }
 0x2f4   :  { %v8027_v47 = vpop.eup %8026  ;;  %v4164_v54 = vadd.f32 %v4163_v29, %v4162_v53  ;;  %v4153_v6 = vsel %vm4114_vm3, %v8025_v26, 0.0 }
 0x2f5   :  { %v8029_v4 = vpop.eup %8028  ;;  %v4154_v55 = vsel %vm4114_vm3, %v8027_v47, 0.0 }
 0x2f6   :  { %v8031_v2 = vpop.eup %8030  ;;  %v4166_v14 = vadd.f32 %v4165_v0, %v4164_v54  ;;  %v4155_v18 = vadd.f32 %v4154_v55, %v4153_v6  ;;  %v4156_v22 = vsel %vm4114_vm3, %v8029_v4, 0.0 }
 0x2f7   :  { %v4158_v28 = vsel %vm4114_vm3, %v8031_v2, 0.0 }
 0x2f8   :  { %8032 = vrcp.f32 %v4166_v14  ;;  %v4157_v27 = vadd.f32 %v4156_v22, %v4155_v18 }
 0x2fa   :  { %v4159_v34 = vadd.f32 %v4158_v28, %v4157_v27 }
 0x2fc   :  { %8034 = vrcp.f32 %v4159_v34 }
 0x302   :  { %v8033_v40 = vpop.eup %8032 }
 0x303   :  { %v4172_v45 = vmul.f32 %v8033_v40, %v4168_v38 }
 0x305   :  { %v4174_v49 = vmul.f32 %v8017_v13, %v4172_v45  ;;  %v4176_v52 = vmul.f32 %v8019_v46, %v4172_v45  ;;  %v4178_v59 = vmul.f32 %v8021_v20, %v4172_v45  ;;  %v4180_v60 = vmul.f32 %v8023_v51, %v4172_v45 }
 0x306   :  { %v8035_v23 = vpop.eup %8034 }
 0x307   :  { %v4170_v30 = vmul.f32 %v8035_v23, %v4167_v48  ;;  %v4188_v42 = vsel %vm4114_vm3, %v4174_v49, 0  ;;  %v4656_v43 = vsel %vm4114_vm3, %v4176_v52, 0  ;;  %v5124_v24 = vsel %vm4114_vm3, %v4178_v59, 0 }
 0x308   :  { %v4194_v17 = vand.u32 4294901760, %v4188_v42  ;;  %v4662_v15 = vand.u32 4294901760, %v4656_v43  ;;  %v5130_v57 = vand.u32 4294901760, %v5124_v24  ;;  %v5592_v62 = vsel %vm4114_vm3, %v4180_v60, 0 }
 0x309   :  { %v4173_v1 = vmul.f32 %v8025_v26, %v4170_v30  ;;  %v4175_v35 = vmul.f32 %v8027_v47, %v4170_v30  ;;  %v4177_v50 = vmul.f32 %v8029_v4, %v4170_v30  ;;  %v4179_v3 = vmul.f32 %v8031_v2, %v4170_v30 }
 0x30a   :  { %v8746_v7 = vsub.f32 %v4188_v42, %v4194_v17  ;;  %v8748_v39 = vsub.f32 %v4656_v43, %v4662_v15  ;;  %v8750_v12 = vsub.f32 %v5124_v24, %v5130_v57  ;;  %v5598_v13 = vand.u32 4294901760, %v5592_v62 }
 0x30b   :  { %v4185_v19 = vsel %vm4114_vm3, %v4173_v1, 0  ;;  %v4653_v56 = vsel %vm4114_vm3, %v4175_v35, 0  ;;  %v5121_v46 = vsel %vm4114_vm3, %v4177_v50, 0  ;;  %v5589_v61 = vsel %vm4114_vm3, %v4179_v3, 0 }
 0x30c   :  { %v4191_v20 = vand.u32 4294901760, %v4185_v19  ;;  %v4659_v31 = vand.u32 4294901760, %v4653_v56  ;;  %v4277_v51 = vand.u32 4294901760, %v8746_v7  ;;  %v4745_v53 = vand.u32 4294901760, %v8748_v39 }
 0x30d   :  { %v5127_v26 = vand.u32 4294901760, %v5121_v46  ;;  %v5595_v63 = vand.u32 4294901760, %v5589_v61  ;;  %v8758_v58 = vsub.f32 %v5592_v62, %v5598_v13  ;;  %v5213_v29 = vand.u32 4294901760, %v8750_v12 }
 0x30e   :  { %v8761_v47 = vpack.c.bf16 %v4194_v17, %v4191_v20  ;;  %v4269_v54 = vsub.f32 %v4185_v19, %v4191_v20  ;;  %v8763_v6 = vpack.c.bf16 %v4662_v15, %v4659_v31  ;;  %v4737_v4 = vsub.f32 %v4653_v56, %v4659_v31 }
 0x30f   :  { %v4278_v0 = vsub.f32 %v8746_v7, %v4277_v51  ;;  %v4746_v55 = vsub.f32 %v8748_v39, %v4745_v53  ;;  %v8767_v2 = vpack.c.bf16 %v5130_v57, %v5127_v26  ;;  %v8769_v14 = vsub.f32 %v5121_v46, %v5127_v26 }
 0x310   :  { %7725 = vmatpush3.bf16.xpose.msra.mxu0 %v8761_v47  ;;  %7743 = vmatpush3.bf16.xpose.msra.mxu1 %v8763_v6  ;;  %v4270_v18 = vand.u32 4294901760, %v4269_v54  ;;  %v4738_v22 = vand.u32 4294901760, %v4737_v4  ;;  %v7730_v27 = vpack.c.bf16 %v8746_v7, %v4269_v54  ;;  %v7748_v28 = vpack.c.bf16 %v8748_v39, %v4737_v4 }
 0x311   :  { %7726 = vmatprep.subr.bf16.mxu0 %v8061_v5  ;;  %7744 = vmatprep.subr.bf16.mxu1 %v8061_v5  ;;  %v4279_v34 = vand.u32 4294901760, %v4278_v0  ;;  %v4747_v38 = vand.u32 4294901760, %v4746_v55  ;;  %v8777_v40 = vpack.c.bf16 %v5598_v13, %v5595_v63  ;;  %v8779_v45 = vsub.f32 %v5589_v61, %v5595_v63 }
 0x312   :  { %v4271_v48 = vsub.f32 %v4269_v54, %v4270_v18  ;;  %v4739_v49 = vsub.f32 %v4737_v4, %v4738_v22  ;;  %v7736_v52 = vpack.c.bf16 %v4277_v51, %v4270_v18  ;;  %v7754_v59 = vpack.c.bf16 %v4745_v53, %v4738_v22  ;;  %v6087_v18 = vld [vmem:[%s8960_s5 + $0x10] sm:$0xff]  ;;  %v6088_v22 = vld [vmem:[%s8960_s5 + $0x18] sm:$0xff] }
 0x313   :  { %v5206_v60 = vand.u32 4294901760, %v8769_v14  ;;  %v5214_v23 = vsub.f32 %v8750_v12, %v5213_v29  ;;  %v5674_v30 = vand.u32 4294901760, %v8779_v45  ;;  %v5681_v42 = vand.u32 4294901760, %v8758_v58 }
 0x314   :  { %v4272_v43 = vand.u32 4294901760, %v4271_v48  ;;  %v4740_v24 = vand.u32 4294901760, %v4739_v49  ;;  %v7766_v17 = vpack.c.bf16 %v8750_v12, %v8769_v14  ;;  %v7784_v15 = vpack.c.bf16 %v8758_v58, %v8779_v45 }
 0x315   :  { %v5207_v57 = vsub.f32 %v8769_v14, %v5206_v60  ;;  %v5215_v62 = vand.u32 4294901760, %v5214_v23  ;;  %v5675_v1 = vsub.f32 %v8779_v45, %v5674_v30  ;;  %v5682_v35 = vsub.f32 %v8758_v58, %v5681_v42 }
 0x316   :  { %v7727_v50 = vpack.c.bf16 %v4279_v34, %v4272_v43  ;;  %v7745_v3 = vpack.c.bf16 %v4747_v38, %v4740_v24  ;;  %v8792_v7 = vpack.c.bf16 %v5213_v29, %v5206_v60  ;;  %v8794_v39 = vpack.c.bf16 %v5681_v42, %v5674_v30 }
 0x317   :  { %7350 = vmatmul.mubr.f32.vlgmr.msra.gmra.mrb[10].mxu0 %v4261_v16  ;;  %7392 = vmatmul.mubr.f32.vlgmr.msra.gmra.mrb[14].mxu1 %v4729_v25  ;;  %v5208_v13 = vand.u32 4294901760, %v5207_v57  ;;  %v5676_v19 = vand.u32 4294901760, %v5675_v1  ;;  %v5683_v56 = vand.u32 4294901760, %v5682_v35  ;;  %v7858_v16 = vadd.f32 %v8596_v11, %v1372_v41 }
 0x318   :  { %7728 = vmatpush3.bf16.xpose.msra.mxu0 %v7727_v50  ;;  %7746 = vmatpush3.bf16.xpose.msra.mxu1 %v7745_v3  ;;  %v7857_v25 = vadd.f32 %v8591_v8, %v1377_v44 }
 0x319   :  { %7356 = vmatprep.mubr.msk.f32.mxu0 %vm8062_vm2, %v8063_v21  ;;  %7398 = vmatprep.mubr.msk.f32.mxu1 %vm8062_vm2, %v8063_v21  ;;  %v7763_v46 = vpack.c.bf16 %v5215_v62, %v5208_v13  ;;  %v7781_v61 = vpack.c.bf16 %v5683_v56, %v5676_v19  ;;  %v5118_v20 = vsel %vm4114_vm3, %v7858_v16, 0 }
 0x31a   :  { %7729 = vmatprep.subr.bf16.mxu0 %v8061_v5  ;;  %7747 = vmatprep.subr.bf16.mxu1 %v8061_v5  ;;  %v5586_v11 = vsel %vm4114_vm3, %v7857_v25, 0  ;;  %v8838_v8 = vand.u32 4294901760, %v5118_v20 }
 0x31f   :  { %7357 = vmatmul.mubr.f32.vlgmr.msra.gmra.mrb[10].mxu0 %v8710_v9  ;;  %7399 = vmatmul.mubr.f32.vlgmr.msra.gmra.mrb[14].mxu1 %v8712_v10 }
 0x320   :  { %7731 = vmatpush3.bf16.xpose.msra.mxu0 %v7730_v27  ;;  %7749 = vmatpush3.bf16.xpose.msra.mxu1 %v7748_v28  ;;  %v6109_v27 = vand.u32 4294901760, %v6087_v18  ;;  %v6112_v28 = vand.u32 4294901760, %v6088_v22 }
 0x321   :  { %7363 = vmatprep.mubr.msk.f32.mxu0 %vm8062_vm2, %v8063_v21  ;;  %7405 = vmatprep.mubr.msk.f32.mxu1 %vm8062_vm2, %v8063_v21 }
 0x322   :  { %7732 = vmatprep.subr.bf16.mxu0 %v8061_v5  ;;  %7750 = vmatprep.subr.bf16.mxu1 %v8061_v5  ;;  %v6207_v49 = vsub.f32 %v6087_v18, %v6109_v27 }
 0x324   :  { %v6208_v23 = vand.u32 4294901760, %v6207_v49 }
 0x326   :  { %v6209_v43 = vsub.f32 %v6207_v49, %v6208_v23 }
 0x327   :  { %7364 = vmatmul.mubr.f32.vlgmr.msra.gmra.mrb[10].mxu0 %v8717_v32  ;;  %7406 = vmatmul.mubr.f32.vlgmr.msra.gmra.mrb[14].mxu1 %v8720_v33  ;;  %v8840_v32 = vand.u32 4294901760, %v5586_v11  ;;  %v5194_v33 = vsub.f32 %v5118_v20, %v8838_v8 }
 0x328   :  { %7734 = vmatpush3.bf16.xpose.msra.mxu0 %v8761_v47  ;;  %7752 = vmatpush3.bf16.xpose.msra.mxu1 %v8763_v6 }
 0x329   :  { %7370 = vmatprep.mubr.msk.f32.mxu0 %vm8062_vm2, %v8063_v21  ;;  %7412 = vmatprep.mubr.msk.f32.mxu1 %vm8062_vm2, %v8063_v21 }
 0x32a   :  { %7735 = vmatprep.subr.bf16.mxu0 %v8061_v5  ;;  %7753 = vmatprep.subr.bf16.mxu1 %v8061_v5 }
 0x32f   :  { %7371 = vmatmul.mubr.f32.vlgmr.msra.gmra.mrb[10].mxu0 %v4259_v36  ;;  %7413 = vmatmul.mubr.f32.vlgmr.msra.gmra.mrb[14].mxu1 %v4727_v37  ;;  %v5662_v36 = vsub.f32 %v5586_v11, %v8840_v32  ;;  %v5195_v37 = vand.u32 4294901760, %v5194_v33 }
 0x330   :  { %7737 = vmatpush3.bf16.xpose.msra.mxu0 %v7736_v52  ;;  %7755 = vmatpush3.bf16.xpose.msra.mxu1 %v7754_v59  ;;  %v6214_v52 = vsub.f32 %v6088_v22, %v6112_v28 }
 0x331   :  { %7377 = vmatprep.mubr.msk.f32.mxu0 %vm8062_vm2, %v8063_v21  ;;  %7419 = vmatprep.mubr.msk.f32.mxu1 %vm8062_vm2, %v8063_v21  ;;  %v5663_v31 = vand.u32 4294901760, %v5662_v36  ;;  %v5196_v51 = vsub.f32 %v5194_v33, %v5195_v37 }
 0x332   :  { %7738 = vmatprep.subr.bf16.mxu0 %v8061_v5  ;;  %7756 = vmatprep.subr.bf16.mxu1 %v8061_v5  ;;  %v6215_v30 = vand.u32 4294901760, %v6214_v52  ;;  %v7815_v1 = vpack.c.bf16 %v6214_v52, %v6207_v49 }
 0x333   :  { %v5664_v53 = vsub.f32 %v5662_v36, %v5663_v31  ;;  %v5197_v26 = vand.u32 4294901760, %v5196_v51 }
 0x334   :  { %v6216_v24 = vsub.f32 %v6214_v52, %v6215_v30  ;;  %v7831_v50 = vpack.c.bf16 %v6215_v30, %v6208_v23 }
 0x337   :  { %7378 = vmatmul.mubr.f32.vlgmr.msra.gmra.mrb[10].mxu0 %v8710_v9  ;;  %7420 = vmatmul.mubr.f32.vlgmr.msra.gmra.mrb[14].mxu1 %v8712_v10 }
 0x338   :  { %7740 = vmatpush3.bf16.xpose.msra.mxu0 %v8761_v47  ;;  %7758 = vmatpush3.bf16.xpose.msra.mxu1 %v8763_v6  ;;  %v6085_v47 = vld [vmem:[%s8960_s5] sm:$0xff] }
 0x339   :  { %7384 = vmatprep.mubr.msk.f32.mxu0 %vm8062_vm2, %v8063_v21  ;;  %7426 = vmatprep.mubr.msk.f32.mxu1 %vm8062_vm2, %v8063_v21  ;;  %v6103_v4 = vand.u32 4294901760, %v6085_v47 }
 0x33a   :  { %7759 = vmatprep.subr.bf16.mxu0 %v8061_v5  ;;  %7777 = vmatprep.subr.bf16.mxu1 %v8061_v5 }
 0x33f   :  { %7385 = vmatmul.mubr.f32.vlgmr.msra.gmra.mrb[10].mxu0 %v8710_v9  ;;  %7427 = vmatmul.mubr.f32.vlgmr.msra.gmra.mrb[14].mxu1 %v8712_v10  ;;  %v5665_v9 = vand.u32 4294901760, %v5664_v53 }
 0x340   :  { %7761 = vmatpush3.bf16.xpose.msra.mxu0 %v8767_v2  ;;  %7779 = vmatpush3.bf16.xpose.msra.mxu1 %v8777_v40 }
 0x341   :  { %7433 = vmatprep.mubr.msk.f32.mxu0 %vm8062_vm2, %v8063_v21  ;;  %7475 = vmatprep.mubr.msk.f32.mxu1 %vm8062_vm2, %v8063_v21 }
 0x342   :  { %7762 = vmatprep.subr.bf16.mxu0 %v8061_v5  ;;  %7780 = vmatprep.subr.bf16.mxu1 %v8061_v5 }
 0x347   :  { %7434 = vmatmul.mubr.f32.vlgmr.msra.gmra.mrb[12].mxu0 %v5197_v26  ;;  %7476 = vmatmul.mubr.f32.vlgmr.msra.gmra.mrb[16].mxu1 %v5665_v9 }
 0x348   :  { %7764 = vmatpush3.bf16.xpose.msra.mxu0 %v7763_v46  ;;  %7782 = vmatpush3.bf16.xpose.msra.mxu1 %v7781_v61 }
 0x349   :  { %7440 = vmatprep.mubr.msk.f32.mxu0 %vm8062_vm2, %v8063_v21  ;;  %7482 = vmatprep.mubr.msk.f32.mxu1 %vm8062_vm2, %v8063_v21 }
 0x34a   :  { %7765 = vmatprep.subr.bf16.mxu0 %v8061_v5  ;;  %7783 = vmatprep.subr.bf16.mxu1 %v8061_v5 }
 0x34f   :  { %7441 = vmatmul.mubr.f32.vlgmr.msra.gmra.mrb[12].mxu0 %v8838_v8  ;;  %7483 = vmatmul.mubr.f32.vlgmr.msra.gmra.mrb[16].mxu1 %v8840_v32 }
 0x350   :  { %7767 = vmatpush3.bf16.xpose.msra.mxu0 %v7766_v17  ;;  %7785 = vmatpush3.bf16.xpose.msra.mxu1 %v7784_v15  ;;  %v6210_v17 = vand.u32 4294901760, %v6209_v43  ;;  %v6217_v15 = vand.u32 4294901760, %v6216_v24 }
 0x351   :  { %7447 = vmatprep.mubr.msk.f32.mxu0 %vm8062_vm2, %v8063_v21  ;;  %7489 = vmatprep.mubr.msk.f32.mxu1 %vm8062_vm2, %v8063_v21 }
 0x352   :  { %7768 = vmatprep.subr.bf16.mxu0 %v8061_v5  ;;  %7786 = vmatprep.subr.bf16.mxu1 %v8061_v5  ;;  %v7807_v57 = vpack.c.bf16 %v6217_v15, %v6210_v17 }
 0x357   :  { %7448 = vmatmul.mubr.f32.vlgmr.msra.gmra.mrb[12].mxu0 %v5194_v33  ;;  %7490 = vmatmul.mubr.f32.vlgmr.msra.gmra.mrb[16].mxu1 %v5662_v36 }
 0x358   :  { %7770 = vmatpush3.bf16.xpose.msra.mxu0 %v8767_v2  ;;  %7788 = vmatpush3.bf16.xpose.msra.mxu1 %v8777_v40 }
 0x359   :  { %7454 = vmatprep.mubr.msk.f32.mxu0 %vm8062_vm2, %v8063_v21  ;;  %7496 = vmatprep.mubr.msk.f32.mxu1 %vm8062_vm2, %v8063_v21 }
 0x35a   :  { %7771 = vmatprep.subr.bf16.mxu0 %v8061_v5  ;;  %7789 = vmatprep.subr.bf16.mxu1 %v8061_v5 }
 0x35f   :  { %7455 = vmatmul.mubr.f32.vlgmr.msra.gmra.mrb[12].mxu0 %v5195_v37  ;;  %7497 = vmatmul.mubr.f32.vlgmr.msra.gmra.mrb[16].mxu1 %v5663_v31 }
 0x360   :  { %7773 = vmatpush3.bf16.xpose.msra.mxu0 %v8792_v7  ;;  %7791 = vmatpush3.bf16.xpose.msra.mxu1 %v8794_v39 }
 0x361   :  { %7461 = vmatprep.mubr.msk.f32.mxu0 %vm8062_vm2, %v8063_v21  ;;  %7503 = vmatprep.mubr.msk.f32.mxu1 %vm8062_vm2, %v8063_v21 }
 0x362   :  { %7774 = vmatprep.subr.bf16.mxu0 %v8061_v5  ;;  %7792 = vmatprep.subr.bf16.mxu1 %v8061_v5 }
 0x367   :  { %7462 = vmatmul.mubr.f32.vlgmr.msra.gmra.mrb[12].mxu0 %v8838_v8  ;;  %7504 = vmatmul.mubr.f32.vlgmr.msra.gmra.mrb[16].mxu1 %v8840_v32 }
 0x368   :  { %7776 = vmatpush3.bf16.xpose.msra.mxu0 %v8767_v2  ;;  %7794 = vmatpush3.bf16.xpose.msra.mxu1 %v8777_v40  ;;  %v6193_v2 = vsub.f32 %v6085_v47, %v6103_v4  ;;  %v8926_v40 = vpack.c.bf16 %v6112_v28, %v6109_v27 }
 0x369   :  { %7468 = vmatprep.mubr.msk.f32.mxu0 %vm8062_vm2, %v8063_v21  ;;  %7510 = vmatprep.mubr.msk.f32.mxu1 %vm8062_vm2, %v8063_v21  ;;  %v6086_v21 = vld [vmem:[%s8960_s5 + $0x8] sm:$0xff] }
 0x36a   :  { %v6106_v0 = vand.u32 4294901760, %v6086_v21  ;;  %v6194_v34 = vand.u32 4294901760, %v6193_v2 }
 0x36c   :  { %v8916_v55 = vpack.c.bf16 %v6106_v0, %v6103_v4  ;;  %v6200_v14 = vsub.f32 %v6086_v21, %v6106_v0  ;;  %v6195_v45 = vsub.f32 %v6193_v2, %v6194_v34 }
 0x36e   :  { %7796 = vmatprep.subr.bf16.mxu0 %v8916_v55  ;;  %v6201_v38 = vand.u32 4294901760, %v6200_v14  ;;  %v6196_v59 = vand.u32 4294901760, %v6195_v45  ;;  %v7811_v62 = vpack.c.bf16 %v6200_v14, %v6193_v2 }
 0x36f   :  { %7469 = vmatmul.mubr.f32.vlgmr.msra.gmra.mrb[12].mxu0 %v8838_v8  ;;  %7511 = vmatmul.mubr.f32.vlgmr.msra.gmra.mrb[16].mxu1 %v8840_v32  ;;  %v6648_v8 = vld [vmem:[%s8961_s6] ss:$0 sm:$0xff] }
 0x370   :  { %7798 = vmatpush3.bf16.msra.mxu0 %v8916_v55  ;;  %v6202_v48 = vsub.f32 %v6200_v14, %v6201_v38  ;;  %v7827_v35 = vpack.c.bf16 %v6201_v38, %v6194_v34 }
 0x371   :  { %7800 = vmatprep.subr.bf16.mxu0 %v8926_v40 }
 0x372   :  { %v6203_v60 = vand.u32 4294901760, %v6202_v48 }
 0x374   :  { %7802 = vmatpush3.bf16.msra.mxu0 %v8926_v40  ;;  %v7803_v42 = vpack.c.bf16 %v6203_v60, %v6196_v59 }
 0x376   :  { %7804 = vmatprep.subr.bf16.mxu0 %v7803_v42 }
 0x412   :  { %v4645_v10 = vpop.f32.mrb[10].mxu0  ;;  %v5113_v5 = vpop.f32.mrb[14].mxu1 }
 0x413   :  { %v7428_v12 = vpop.f32.mrb[15].mxu1  ;;  %6053 = vxpose.xlu1.b32.start [1/4] (short) (narrow) %v4645_v10, 16  ;;  %v7386_v63 = vpop.f32.mrb[11].mxu0 }
 0x417   :  { %6054 = vxpose.xlu1.b32.cont [2/4] (short) (narrow) %v5113_v5, 16 }
 0x442   :  { %v5581_v58 = vpop.f32.mrb[12].mxu0  ;;  %v6049_v29 = vpop.f32.mrb[16].mxu1 }
 0x443   :  { %6055 = vxpose.xlu1.b32.cont [3/4] (short) (narrow) %v5581_v58, 16  ;;  %v7470_v54 = vpop.f32.mrb[13].mxu0  ;;  %v7512_v6 = vpop.f32.mrb[17].mxu1 }
 0x447   :  { %6056 = vxpose.xlu1.b32.end [4/4] (short) (narrow) %v6049_v29, 16 }
 0x4bb   :  { %v6069_v3 = vpop.trf.xlu1 }
 0x4bc   :  { %v6097_v7 = vsel %vm62_vm0, %v6069_v3, 0 }
 0x4bd   :  { %v6171_v39 = vand.u32 4294901760, %v6097_v7 }
 0x4bf   :  { %v6172_v13 = vsub.f32 %v6097_v7, %v6171_v39  ;;  %v6070_v19 = vpop.trf.xlu1 }
 0x4c0   :  { %v6100_v56 = vsel %vm62_vm0, %v6070_v19, 0 }
 0x4c1   :  { %v6173_v46 = vand.u32 4294901760, %v6172_v13  ;;  %v6181_v61 = vand.u32 4294901760, %v6100_v56 }
 0x4c3   :  { %v6182_v41 = vsub.f32 %v6100_v56, %v6181_v61  ;;  %v6174_v44 = vsub.f32 %v6172_v13, %v6173_v46 }
 0x4c5   :  { %v6183_v16 = vand.u32 4294901760, %v6182_v41  ;;  %v6175_v25 = vand.u32 4294901760, %v6174_v44 }
 0x4c7   :  { %v6184_v20 = vsub.f32 %v6182_v41, %v6183_v16  ;;  %7521 = vmatprep.mubr.f32.mxu0 %v6175_v25 }
 0x4c9   :  { %v6185_v11 = vand.u32 4294901760, %v6184_v20 }
 0x4cb   :  { %7522 = vmatmul.mubr.f32.vlgmr.msra.gmra.mrb[14].mxu0 %v6185_v11 }
 0x4cc   :  { %7806 = vmatpush3.bf16.msra.mxu0 %v7803_v42  ;;  %7532 = vmatprep.mubr.f32.mxu0 %v6171_v39 }
 0x4cd   :  { %7808 = vmatprep.subr.bf16.mxu0 %v7807_v57 }
 0x4d0   :  { %7810 = vmatpush3.bf16.msra.mxu0 %v7807_v57 }
 0x4d1   :  { %7812 = vmatprep.subr.bf16.mxu0 %v7811_v62 }
 0x4d3   :  { %7533 = vmatmul.mubr.f32.vlgmr.msra.gmra.mrb[14].mxu0 %v6181_v61 }
 0x4d4   :  { %7814 = vmatpush3.bf16.msra.mxu0 %v7811_v62  ;;  %7543 = vmatprep.mubr.f32.mxu0 %v6172_v13 }
 0x4d5   :  { %7816 = vmatprep.subr.bf16.mxu0 %v7815_v1 }
 0x4d8   :  { %7818 = vmatpush3.bf16.msra.mxu0 %v7815_v1 }
 0x4d9   :  { %7820 = vmatprep.subr.bf16.mxu0 %v8916_v55 }
 0x4db   :  { %7544 = vmatmul.mubr.f32.vlgmr.msra.gmra.mrb[14].mxu0 %v6182_v41 }
 0x4dc   :  { %7822 = vmatpush3.bf16.msra.mxu0 %v8916_v55  ;;  %7554 = vmatprep.mubr.f32.mxu0 %v6173_v46 }
 0x4dd   :  { %7824 = vmatprep.subr.bf16.mxu0 %v8926_v40 }
 0x4e0   :  { %7826 = vmatpush3.bf16.msra.mxu0 %v8926_v40 }
 0x4e1   :  { %7828 = vmatprep.subr.bf16.mxu0 %v7827_v35 }
 0x4e3   :  { %7555 = vmatmul.mubr.f32.vlgmr.msra.gmra.mrb[14].mxu0 %v6183_v16 }
 0x4e4   :  { %7830 = vmatpush3.bf16.msra.mxu0 %v7827_v35  ;;  %7565 = vmatprep.mubr.f32.mxu0 %v6171_v39 }
 0x4e5   :  { %7832 = vmatprep.subr.bf16.mxu0 %v7831_v50 }
 0x4e8   :  { %7834 = vmatpush3.bf16.msra.mxu0 %v7831_v50 }
 0x4e9   :  { %7836 = vmatprep.subr.bf16.mxu0 %v8916_v55 }
 0x4eb   :  { %7566 = vmatmul.mubr.f32.vlgmr.msra.gmra.mrb[14].mxu0 %v6181_v61 }
 0x4ec   :  { %7838 = vmatpush3.bf16.msra.mxu0 %v8916_v55  ;;  %7576 = vmatprep.mubr.f32.mxu0 %v6171_v39 }
 0x4ed   :  { %7840 = vmatprep.subr.bf16.mxu0 %v8926_v40 }
 0x4f0   :  { %7842 = vmatpush3.bf16.msra.mxu0 %v8926_v40 }
 0x4f3   :  { %7577 = vmatmul.mubr.f32.vlgmr.msra.gmra.mrb[14].mxu0 %v6181_v61 }
 0x5c6   :  { %v7578_v32 = vpop.f32.mrb[14].mxu0 }
 0x5c7   :  { %v7859_v33 = vadd.f32 %v7578_v32, %v6648_v8  ;;  %v6620_v36 = vpop.f32.mrb[15].mxu0 }
 0x5c8   :  { %v7860_v37 = vadd.f32 %v6648_v8, %v6620_v36 }
 0x5c9   :  { %6631 = vst [vmem:[#allocation2 + $0x8] sm:$0xff] %v7859_v33 }
 0x5ca   :  { %6630 = vst [vmem:[#allocation2] sm:$0xff] %v7860_v37 }
 0x5cb   :  { %8047 = shalt.err (!%p8044_p4)
}
 0x5cc   :  { %s8048_s6 = scalar_lea.hbm %s8963_s8, 256 }
 0x5cd   :  { %p8049_p5 = scmp.ne.s32.totalorder %s8963_s8, %s8048_s6  ;;  %p8052_p6 = scmp.lt.u32.totalorder %s8048_s6, %s8963_s8 }
 0x5cf   :  { %p8054_p7 = pnand %p8052_p6, %p8049_p5 }
 0x5d1   :  { %8057 = shalt.err (!%p8054_p7)
}
 0x5d2   :  { %s8065_s20 = smov 128   ;;  %s8066_s21 = smov 8  }
 0x5d3   :  { %6643 = dma.vmem_to_hbm [thread:$0]  %s6638_s3, 256, %s8963_s8, [#allocation3], %s8065_s20, %s8065_s20, %s8066_s21  }
 0x5d4   :  { %8058 = dma.done.wait [#allocation3], 256  }
 0x5d5   :  { %8059 = vsyncadd [#allocation3], 4294967040 }
 0x5d6   :  { %6647 = vsyncpa [#allocation3], 1 }

</bundles_post_ra>
